<compile_context>
chip_gen: v6e
topology: v6e:2x2x1
jax: 0.10.0
libtpu: 0.0.40
codegen_flags: <defaults>
</compile_context>

<pallas_src>
import functools

import jax
import jax.numpy as jnp
from jax.experimental import pallas as pl
from jax.experimental.pallas import tpu as pltpu


def _round_up(x, m):
    return (x + m - 1) // m * m


def _cdiv(a, b):
    return -(-a // b)


def _pick_spatial_tile(total_lanes, halo_block, per_lane_bytes,
                       vmem_budget=16 * 1024 * 1024, cap=4096):
    """Lane-tile size (multiple of halo_block) and tile count, VMEM-budgeted."""
    tmax = min(cap, vmem_budget // max(per_lane_bytes, 1))
    tmax = max(halo_block, tmax // halo_block * halo_block)
    tmax = min(tmax, _round_up(total_lanes, halo_block))
    n_tiles = _cdiv(total_lanes, tmax)
    tile = _round_up(_cdiv(total_lanes, n_tiles), halo_block)
    return int(tile), int(n_tiles)


def _convlstm_cell_kernel(xm_ref, xh_ref, w_ref, b_ref, c_ref,
                          h_ref, c_out_ref, win_ref, *, chid, k, wp, ts):
    # xm_ref : (Cin, tS)            bf16  main lane window of flattened input
    # xh_ref : (Cin, HB)            bf16  halo (next tile's head)
    # w_ref  : (K*K, 4*chid, Cin)   bf16  per-tap conv weights
    # b_ref  : (4*chid, 1)          f32   conv bias
    # c_ref  : (chid, tS)           f32   current cell state
    # h_ref  : (chid, tS)                 h_next (f32 or bf16)
    # c_out  : (chid, tS)           f32   c_next
    # win_ref: (Cin, tS + HB)       bf16  VMEM scratch (haloed window)

    # Assemble the haloed window once; both copies are lane-aligned.
    win_ref[:, :ts] = xm_ref[...]
    win_ref[:, ts:] = xh_ref[...]

    # Fused 'same' conv: K*K accumulating MXU matmuls over statically shifted
    # lane windows.  Contraction = Cin; accumulation + bias in f32.
    acc = None
    for ky in range(k):
        for kx in range(k):
            tap = ky * k + kx
            d = ky * wp + kx
            part = jnp.dot(w_ref[tap], win_ref[:, d:d + ts],
                           preferred_element_type=jnp.float32)
            acc = (part + b_ref[...]) if acc is None else (acc + part)

    # Gate slices are whole sublane groups (chid % 8 == 0 enforced by wrapper).
    cc_i = acc[0 * chid:1 * chid, :]
    cc_f = acc[1 * chid:2 * chid, :]
    cc_o = acc[2 * chid:3 * chid, :]
    cc_g = acc[3 * chid:4 * chid, :]

    def sigmoid(v):  # one EUP tanh per gate instead of exp + divide
        return 0.5 * (jnp.tanh(0.5 * v) + 1.0)

    i = sigmoid(cc_i)
    f = sigmoid(cc_f)
    o = sigmoid(cc_o)
    g = jnp.tanh(cc_g)

    c_next = f * c_ref[...] + i * g
    c_out_ref[...] = c_next
    h_ref[...] = (o * jnp.tanh(c_next)).astype(h_ref.dtype)


def convlstm_cell_forward(x_nchw, h_nchw, c_nchw, weight_oihw, bias,
                          kernel_size, h_dtype=jnp.float32):
    """Pallas ConvLSTMCell.forward.  Inputs/outputs are NCHW (PyTorch layout)."""
    B, Ci, H, W = x_nchw.shape
    Chid = h_nchw.shape[1]
    K = kernel_size
    if K % 2 != 1:
        # padding = K // 2 only reproduces a 'same' conv for odd kernel sizes
        # (same implicit restriction as the PyTorch module).
        raise ValueError("kernel_size must be odd")
    p = K // 2
    Hp, Wp = H + 2 * p, W + 2 * p
    Cin = Ci + Chid
    Chid_p = _round_up(Chid, 8)          # whole-sublane gate slices in kernel

    # Flattened shift-conv coordinates: output position s = y*Wp + x; tap
    # (ky,kx) reads flattened padded-input position s + ky*Wp + kx.
    max_shift = (K - 1) * Wp + (K - 1)
    HB = _round_up(max(max_shift, 1), 128)   # halo block, lane-aligned
    L_seg = _round_up(Hp * Wp, 128)          # per-batch lane segment
    total = B * L_seg                        # batch folded into the lane axis

    h_bytes = jnp.dtype(h_dtype).itemsize
    per_lane = (2 * Cin * 2              # main input block, 2x buffered, bf16
                + 2 * Chid_p * 4         # c_cur block
                + 2 * Chid_p * 4         # c_next block
                + 2 * Chid_p * h_bytes   # h_next block
                + Cin * 2                # window scratch
                + 4 * Chid_p * 4)        # f32 gate accumulator
    tS, n_tiles = _pick_spatial_tile(total, HB, per_lane)
    L_fold = n_tiles * tS
    spt = tS // HB                       # halo blocks per spatial tile

    f32 = jnp.float32

    # ---- operand packing (each is one XLA producer fusion) -----------------
    combined = jnp.concatenate([x_nchw, h_nchw], axis=1).astype(f32)
    comb_p = jnp.pad(combined, ((0, 0), (0, 0), (p, p), (p, p)))
    in_flat = comb_p.reshape(B, Cin, Hp * Wp)
    in_flat = jnp.pad(in_flat, ((0, 0), (0, 0), (0, L_seg - Hp * Wp)))
    in_flat = in_flat.transpose(1, 0, 2).reshape(Cin, total)
    in_flat = jnp.pad(in_flat, ((0, 0), (0, L_fold - total + HB)))
    in_flat = in_flat.astype(jnp.bfloat16)            # (Cin, L_fold + HB)

    c_p = jnp.pad(c_nchw.astype(f32),
                  ((0, 0), (0, Chid_p - Chid), (0, 0), (0, 2 * p)))
    c_flat = c_p.reshape(B, Chid_p, H * Wp)
    c_flat = jnp.pad(c_flat, ((0, 0), (0, 0), (0, L_seg - H * Wp)))
    c_flat = c_flat.transpose(1, 0, 2).reshape(Chid_p, total)
    c_flat = jnp.pad(c_flat, ((0, 0), (0, L_fold - total)))  # (Chid_p, L_fold)

    # weight[o, c, ky, kx] -> w_taps[ky*K+kx, g*Chid_p + m, c] (gate order i,f,o,g)
    w4 = weight_oihw.reshape(4, Chid, Cin, K, K).astype(f32)
    w4 = jnp.pad(w4, ((0, 0), (0, Chid_p - Chid), (0, 0), (0, 0), (0, 0)))
    w_taps = (w4.transpose(3, 4, 0, 1, 2)
              .reshape(K * K, 4 * Chid_p, Cin).astype(jnp.bfloat16))

    b2 = jnp.pad(bias.reshape(4, Chid).astype(f32),
                 ((0, 0), (0, Chid_p - Chid))).reshape(4 * Chid_p, 1)

    kernel = functools.partial(_convlstm_cell_kernel,
                               chid=Chid_p, k=K, wp=Wp, ts=tS)

    h_flat, c_next_flat = pl.pallas_call(
        kernel,
        out_shape=(jax.ShapeDtypeStruct((Chid_p, L_fold), h_dtype),
                   jax.ShapeDtypeStruct((Chid_p, L_fold), f32)),
        grid=(n_tiles,),
        in_specs=[
            pl.BlockSpec((Cin, tS), lambda j: (0, j)),
            pl.BlockSpec((Cin, HB), lambda j: (0, (j + 1) * spt)),
            pl.BlockSpec((K * K, 4 * Chid_p, Cin), lambda j: (0, 0, 0)),
            pl.BlockSpec((4 * Chid_p, 1), lambda j: (0, 0)),
            pl.BlockSpec((Chid_p, tS), lambda j: (0, j)),
        ],
        out_specs=(
            pl.BlockSpec((Chid_p, tS), lambda j: (0, j)),
            pl.BlockSpec((Chid_p, tS), lambda j: (0, j)),
        ),
        scratch_shapes=[pltpu.VMEM((Cin, tS + HB), jnp.bfloat16)],
        input_output_aliases={4: 1},     # c_cur buffer reused for c_next
        compiler_params=pltpu.CompilerParams(
            dimension_semantics=("parallel",),
            # 48 MiB: leaves >=16 MiB headroom on v7x (64 MiB physical) while
            # comfortably covering the budgeted <=16 MiB per-step working set.
            vmem_limit_bytes=48 * 1024 * 1024),
    )(in_flat, in_flat, w_taps, b2, c_flat)

    def _unfold(flat):
        o = flat[:Chid, :total].reshape(Chid, B, L_seg)
        o = o[:, :, :H * Wp].reshape(Chid, B, H, Wp)[:, :, :, :W]
        return o.transpose(1, 0, 2, 3)

    return _unfold(h_flat), _unfold(c_next_flat)


def _reference_forward(x_nchw, h_nchw, c_nchw, weight_oihw, bias):
    """Pure-JAX f32 reference matching the PyTorch ConvLSTMCell.forward."""
    combined = jnp.concatenate([x_nchw, h_nchw], axis=1)
    conv = jax.lax.conv_general_dilated(
        combined, weight_oihw, window_strides=(1, 1), padding="SAME",
        dimension_numbers=("NCHW", "OIHW", "NCHW"))
    conv = conv + bias.reshape(1, -1, 1, 1)
    cc_i, cc_f, cc_o, cc_g = jnp.split(conv, 4, axis=1)
    i = jax.nn.sigmoid(cc_i)
    f = jax.nn.sigmoid(cc_f)
    o = jax.nn.sigmoid(cc_o)
    g = jnp.tanh(cc_g)
    c_next = f * c_nchw + i * g
    h_next = o * jnp.tanh(c_next)
    return h_next, c_next


if __name__ == "__main__":
    # Small deterministic config (matches module: in_channels = input_dim +
    # hidden_dim, out_channels = 4 * hidden_dim, padding = kernel_size // 2).
    B, input_dim, hidden_dim, H, W, K = 2, 4, 8, 16, 16, 3

    key = jax.random.PRNGKey(0)
    k_x, k_h, k_c, k_w, k_b = jax.random.split(key, 5)

    x = jax.random.normal(k_x, (B, input_dim, H, W), jnp.float32)
    h_cur = jax.random.normal(k_h, (B, hidden_dim, H, W), jnp.float32)
    c_cur = jax.random.normal(k_c, (B, hidden_dim, H, W), jnp.float32)

    # Conv2d(in=input_dim+hidden_dim, out=4*hidden_dim, K, bias=True) params,
    # uniform(-1/sqrt(fan_in), 1/sqrt(fan_in)) like PyTorch's default init.
    fan_in = (input_dim + hidden_dim) * K * K
    bound = 1.0 / float(fan_in) ** 0.5
    weight = jax.random.uniform(
        k_w, (4 * hidden_dim, input_dim + hidden_dim, K, K),
        jnp.float32, -bound, bound)
    bias = jax.random.uniform(k_b, (4 * hidden_dim,), jnp.float32, -bound, bound)

    h_expected, c_expected = _reference_forward(x, h_cur, c_cur, weight, bias)
    jax.block_until_ready((h_expected, c_expected))

    fwd = jax.jit(convlstm_cell_forward,
                  static_argnames=("kernel_size", "h_dtype"))
    h_next, c_next = fwd(x, h_cur, c_cur, weight, bias, kernel_size=K)
    jax.block_until_ready((h_next, c_next))

    assert h_next.shape == (B, hidden_dim, H, W)
    assert c_next.shape == (B, hidden_dim, H, W)
    # bf16 MXU operands with f32 accumulation -> relaxed tolerance vs f32 ref.
    assert jnp.allclose(h_next, h_expected, atol=2e-2, rtol=2e-2)
    assert jnp.allclose(c_next, c_expected, atol=2e-2, rtol=2e-2)

    print("KERNEL_OK")
</pallas_src>

<mosaic_0001>
module attributes {stable_mosaic.version = 11 : i64} {
  func.func @_convlstm_cell_kernel(%arg0: i32, %arg1: memref<12x768xbf16, #tpu.memory_space<vmem>>, %arg2: memref<12x128xbf16, #tpu.memory_space<vmem>>, %arg3: memref<9x32x12xbf16, #tpu.memory_space<vmem>>, %arg4: memref<32x1xf32, #tpu.memory_space<vmem>>, %arg5: memref<8x768xf32, #tpu.memory_space<vmem>>, %arg6: memref<8x768xf32, #tpu.memory_space<vmem>>, %arg7: memref<8x768xf32, #tpu.memory_space<vmem>>, %arg8: memref<12x896xbf16, #tpu.memory_space<vmem>>) attributes {dimension_semantics = [#tpu.dimension_semantics<parallel>], iteration_bounds = array<i64: 1>, scalar_prefetch = 0 : i64, scratch_operands = 1 : i64, tpu.core_type = #tpu.core_type<tc>, window_params = [{transform_indices = @transform_0, window_bounds = array<i64: 12, 768>}, {transform_indices = @transform_1, window_bounds = array<i64: 12, 128>}, {pipeline_mode = #tpu.pipeline_mode<synchronous>, transform_indices = @transform_2, window_bounds = array<i64: 9, 32, 12>}, {pipeline_mode = #tpu.pipeline_mode<synchronous>, transform_indices = @transform_3, window_bounds = array<i64: 32, 1>}, {transform_indices = @transform_4, window_bounds = array<i64: 8, 768>}, {transform_indices = @transform_5, window_bounds = array<i64: 8, 768>}, {transform_indices = @transform_6, window_bounds = array<i64: 8, 768>}]} {
    %c0 = arith.constant 0 : index
    %c0_0 = arith.constant 0 : index
    %0 = vector.load %arg1[%c0, %c0_0] : memref<12x768xbf16, #tpu.memory_space<vmem>>, vector<12x768xbf16>
    %c0_1 = arith.constant 0 : index
    %c0_2 = arith.constant 0 : index
    %1 = vector.load %arg8[%c0_1, %c0_2] : memref<12x896xbf16, #tpu.memory_space<vmem>>, vector<12x768xbf16>
    tpu.vector_store %arg8[%c0_1, %c0_2], %0 {strides = array<i32>} : memref<12x896xbf16, #tpu.memory_space<vmem>>, vector<12x768xbf16>,
    %c0_3 = arith.constant 0 : index
    %c0_4 = arith.constant 0 : index
    %2 = vector.load %arg2[%c0_3, %c0_4] : memref<12x128xbf16, #tpu.memory_space<vmem>>, vector<12x128xbf16>
    %c0_5 = arith.constant 0 : index
    %c768 = arith.constant 768 : index
    %3 = vector.load %arg8[%c0_5, %c768] : memref<12x896xbf16, #tpu.memory_space<vmem>>, vector<12x128xbf16>
    tpu.vector_store %arg8[%c0_5, %c768], %2 {strides = array<i32>} : memref<12x896xbf16, #tpu.memory_space<vmem>>, vector<12x128xbf16>,
    %c0_6 = arith.constant 0 : index
    %c0_7 = arith.constant 0 : index
    %c0_8 = arith.constant 0 : index
    %4 = vector.load %arg3[%c0_6, %c0_7, %c0_8] : memref<9x32x12xbf16, #tpu.memory_space<vmem>>, vector<1x32x12xbf16>
    %5 = vector.shape_cast %4 : vector<1x32x12xbf16> to vector<32x12xbf16>
    %c0_9 = arith.constant 0 : index
    %c0_10 = arith.constant 0 : index
    %6 = vector.load %arg8[%c0_9, %c0_10] : memref<12x896xbf16, #tpu.memory_space<vmem>>, vector<12x768xbf16>
    %cst = arith.constant dense<0.000000e+00> : vector<32x768xf32>
    %7 = tpu.matmul %5, %6, %cst {dimension_numbers = #tpu.dot_dimension_numbers<[1], [0], [0], [1], [0, 0, 1, 1], [], []>} : vector<32x12xbf16>, vector<12x768xbf16>, vector<32x768xf32> -> vector<32x768xf32>
    %c0_11 = arith.constant 0 : index
    %c0_12 = arith.constant 0 : index
    %8 = vector.load %arg4[%c0_11, %c0_12] : memref<32x1xf32, #tpu.memory_space<vmem>>, vector<32x1xf32>
    %9 = vector.broadcast %8 : vector<32x1xf32> to vector<32x768xf32>
    %10 = arith.addf %7, %9 : vector<32x768xf32>
    %c1 = arith.constant 1 : index
    %c0_13 = arith.constant 0 : index
    %c0_14 = arith.constant 0 : index
    %11 = vector.load %arg3[%c1, %c0_13, %c0_14] : memref<9x32x12xbf16, #tpu.memory_space<vmem>>, vector<1x32x12xbf16>
    %12 = vector.shape_cast %11 : vector<1x32x12xbf16> to vector<32x12xbf16>
    %c0_15 = arith.constant 0 : index
    %c1_16 = arith.constant 1 : index
    %13 = vector.load %arg8[%c0_15, %c1_16] : memref<12x896xbf16, #tpu.memory_space<vmem>>, vector<12x768xbf16>
    %cst_17 = arith.constant dense<0.000000e+00> : vector<32x768xf32>
    %14 = tpu.matmul %12, %13, %cst_17 {dimension_numbers = #tpu.dot_dimension_numbers<[1], [0], [0], [1], [0, 0, 1, 1], [], []>} : vector<32x12xbf16>, vector<12x768xbf16>, vector<32x768xf32> -> vector<32x768xf32>
    %15 = arith.addf %10, %14 : vector<32x768xf32>
    %c2 = arith.constant 2 : index
    %c0_18 = arith.constant 0 : index
    %c0_19 = arith.constant 0 : index
    %16 = vector.load %arg3[%c2, %c0_18, %c0_19] : memref<9x32x12xbf16, #tpu.memory_space<vmem>>, vector<1x32x12xbf16>
    %17 = vector.shape_cast %16 : vector<1x32x12xbf16> to vector<32x12xbf16>
    %c0_20 = arith.constant 0 : index
    %c2_21 = arith.constant 2 : index
    %18 = vector.load %arg8[%c0_20, %c2_21] : memref<12x896xbf16, #tpu.memory_space<vmem>>, vector<12x768xbf16>
    %cst_22 = arith.constant dense<0.000000e+00> : vector<32x768xf32>
    %19 = tpu.matmul %17, %18, %cst_22 {dimension_numbers = #tpu.dot_dimension_numbers<[1], [0], [0], [1], [0, 0, 1, 1], [], []>} : vector<32x12xbf16>, vector<12x768xbf16>, vector<32x768xf32> -> vector<32x768xf32>
    %20 = arith.addf %15, %19 : vector<32x768xf32>
    %c3 = arith.constant 3 : index
    %c0_23 = arith.constant 0 : index
    %c0_24 = arith.constant 0 : index
    %21 = vector.load %arg3[%c3, %c0_23, %c0_24] : memref<9x32x12xbf16, #tpu.memory_space<vmem>>, vector<1x32x12xbf16>
    %22 = vector.shape_cast %21 : vector<1x32x12xbf16> to vector<32x12xbf16>
    %c0_25 = arith.constant 0 : index
    %c18 = arith.constant 18 : index
    %23 = vector.load %arg8[%c0_25, %c18] : memref<12x896xbf16, #tpu.memory_space<vmem>>, vector<12x768xbf16>
    %cst_26 = arith.constant dense<0.000000e+00> : vector<32x768xf32>
    %24 = tpu.matmul %22, %23, %cst_26 {dimension_numbers = #tpu.dot_dimension_numbers<[1], [0], [0], [1], [0, 0, 1, 1], [], []>} : vector<32x12xbf16>, vector<12x768xbf16>, vector<32x768xf32> -> vector<32x768xf32>
    %25 = arith.addf %20, %24 : vector<32x768xf32>
    %c4 = arith.constant 4 : index
    %c0_27 = arith.constant 0 : index
    %c0_28 = arith.constant 0 : index
    %26 = vector.load %arg3[%c4, %c0_27, %c0_28] : memref<9x32x12xbf16, #tpu.memory_space<vmem>>, vector<1x32x12xbf16>
    %27 = vector.shape_cast %26 : vector<1x32x12xbf16> to vector<32x12xbf16>
    %c0_29 = arith.constant 0 : index
    %c19 = arith.constant 19 : index
    %28 = vector.load %arg8[%c0_29, %c19] : memref<12x896xbf16, #tpu.memory_space<vmem>>, vector<12x768xbf16>
    %cst_30 = arith.constant dense<0.000000e+00> : vector<32x768xf32>
    %29 = tpu.matmul %27, %28, %cst_30 {dimension_numbers = #tpu.dot_dimension_numbers<[1], [0], [0], [1], [0, 0, 1, 1], [], []>} : vector<32x12xbf16>, vector<12x768xbf16>, vector<32x768xf32> -> vector<32x768xf32>
    %30 = arith.addf %25, %29 : vector<32x768xf32>
    %c5 = arith.constant 5 : index
    %c0_31 = arith.constant 0 : index
    %c0_32 = arith.constant 0 : index
    %31 = vector.load %arg3[%c5, %c0_31, %c0_32] : memref<9x32x12xbf16, #tpu.memory_space<vmem>>, vector<1x32x12xbf16>
    %32 = vector.shape_cast %31 : vector<1x32x12xbf16> to vector<32x12xbf16>
    %c0_33 = arith.constant 0 : index
    %c20 = arith.constant 20 : index
    %33 = vector.load %arg8[%c0_33, %c20] : memref<12x896xbf16, #tpu.memory_space<vmem>>, vector<12x768xbf16>
    %cst_34 = arith.constant dense<0.000000e+00> : vector<32x768xf32>
    %34 = tpu.matmul %32, %33, %cst_34 {dimension_numbers = #tpu.dot_dimension_numbers<[1], [0], [0], [1], [0, 0, 1, 1], [], []>} : vector<32x12xbf16>, vector<12x768xbf16>, vector<32x768xf32> -> vector<32x768xf32>
    %35 = arith.addf %30, %34 : vector<32x768xf32>
    %c6 = arith.constant 6 : index
    %c0_35 = arith.constant 0 : index
    %c0_36 = arith.constant 0 : index
    %36 = vector.load %arg3[%c6, %c0_35, %c0_36] : memref<9x32x12xbf16, #tpu.memory_space<vmem>>, vector<1x32x12xbf16>
    %37 = vector.shape_cast %36 : vector<1x32x12xbf16> to vector<32x12xbf16>
    %c0_37 = arith.constant 0 : index
    %c36 = arith.constant 36 : index
    %38 = vector.load %arg8[%c0_37, %c36] : memref<12x896xbf16, #tpu.memory_space<vmem>>, vector<12x768xbf16>
    %cst_38 = arith.constant dense<0.000000e+00> : vector<32x768xf32>
    %39 = tpu.matmul %37, %38, %cst_38 {dimension_numbers = #tpu.dot_dimension_numbers<[1], [0], [0], [1], [0, 0, 1, 1], [], []>} : vector<32x12xbf16>, vector<12x768xbf16>, vector<32x768xf32> -> vector<32x768xf32>
    %40 = arith.addf %35, %39 : vector<32x768xf32>
    %c7 = arith.constant 7 : index
    %c0_39 = arith.constant 0 : index
    %c0_40 = arith.constant 0 : index
    %41 = vector.load %arg3[%c7, %c0_39, %c0_40] : memref<9x32x12xbf16, #tpu.memory_space<vmem>>, vector<1x32x12xbf16>
    %42 = vector.shape_cast %41 : vector<1x32x12xbf16> to vector<32x12xbf16>
    %c0_41 = arith.constant 0 : index
    %c37 = arith.constant 37 : index
    %43 = vector.load %arg8[%c0_41, %c37] : memref<12x896xbf16, #tpu.memory_space<vmem>>, vector<12x768xbf16>
    %cst_42 = arith.constant dense<0.000000e+00> : vector<32x768xf32>
    %44 = tpu.matmul %42, %43, %cst_42 {dimension_numbers = #tpu.dot_dimension_numbers<[1], [0], [0], [1], [0, 0, 1, 1], [], []>} : vector<32x12xbf16>, vector<12x768xbf16>, vector<32x768xf32> -> vector<32x768xf32>
    %45 = arith.addf %40, %44 : vector<32x768xf32>
    %c8 = arith.constant 8 : index
    %c0_43 = arith.constant 0 : index
    %c0_44 = arith.constant 0 : index
    %46 = vector.load %arg3[%c8, %c0_43, %c0_44] : memref<9x32x12xbf16, #tpu.memory_space<vmem>>, vector<1x32x12xbf16>
    %47 = vector.shape_cast %46 : vector<1x32x12xbf16> to vector<32x12xbf16>
    %c0_45 = arith.constant 0 : index
    %c38 = arith.constant 38 : index
    %48 = vector.load %arg8[%c0_45, %c38] : memref<12x896xbf16, #tpu.memory_space<vmem>>, vector<12x768xbf16>
    %cst_46 = arith.constant dense<0.000000e+00> : vector<32x768xf32>
    %49 = tpu.matmul %47, %48, %cst_46 {dimension_numbers = #tpu.dot_dimension_numbers<[1], [0], [0], [1], [0, 0, 1, 1], [], []>} : vector<32x12xbf16>, vector<12x768xbf16>, vector<32x768xf32> -> vector<32x768xf32>
    %50 = arith.addf %45, %49 : vector<32x768xf32>
    %51 = vector.extract_strided_slice %50 {offsets = [0, 0], sizes = [8, 768], strides = [1, 1]} : vector<32x768xf32> to vector<8x768xf32>
    %52 = vector.extract_strided_slice %50 {offsets = [8, 0], sizes = [8, 768], strides = [1, 1]} : vector<32x768xf32> to vector<8x768xf32>
    %53 = vector.extract_strided_slice %50 {offsets = [16, 0], sizes = [8, 768], strides = [1, 1]} : vector<32x768xf32> to vector<8x768xf32>
    %54 = vector.extract_strided_slice %50 {offsets = [24, 0], sizes = [8, 768], strides = [1, 1]} : vector<32x768xf32> to vector<8x768xf32>
    %cst_47 = arith.constant 5.000000e-01 : f32
    %55 = vector.broadcast %cst_47 : f32 to vector<8x768xf32>
    %56 = arith.mulf %55, %51 : vector<8x768xf32>
    %57 = math.tanh %56 : vector<8x768xf32>
    %cst_48 = arith.constant 1.000000e+00 : f32
    %58 = vector.broadcast %cst_48 : f32 to vector<8x768xf32>
    %59 = arith.addf %57, %58 : vector<8x768xf32>
    %cst_49 = arith.constant 5.000000e-01 : f32
    %60 = vector.broadcast %cst_49 : f32 to vector<8x768xf32>
    %61 = arith.mulf %60, %59 : vector<8x768xf32>
    %cst_50 = arith.constant 5.000000e-01 : f32
    %62 = vector.broadcast %cst_50 : f32 to vector<8x768xf32>
    %63 = arith.mulf %62, %52 : vector<8x768xf32>
    %64 = math.tanh %63 : vector<8x768xf32>
    %cst_51 = arith.constant 1.000000e+00 : f32
    %65 = vector.broadcast %cst_51 : f32 to vector<8x768xf32>
    %66 = arith.addf %64, %65 : vector<8x768xf32>
    %cst_52 = arith.constant 5.000000e-01 : f32
    %67 = vector.broadcast %cst_52 : f32 to vector<8x768xf32>
    %68 = arith.mulf %67, %66 : vector<8x768xf32>
    %cst_53 = arith.constant 5.000000e-01 : f32
    %69 = vector.broadcast %cst_53 : f32 to vector<8x768xf32>
    %70 = arith.mulf %69, %53 : vector<8x768xf32>
    %71 = math.tanh %70 : vector<8x768xf32>
    %cst_54 = arith.constant 1.000000e+00 : f32
    %72 = vector.broadcast %cst_54 : f32 to vector<8x768xf32>
    %73 = arith.addf %71, %72 : vector<8x768xf32>
    %cst_55 = arith.constant 5.000000e-01 : f32
    %74 = vector.broadcast %cst_55 : f32 to vector<8x768xf32>
    %75 = arith.mulf %74, %73 : vector<8x768xf32>
    %76 = math.tanh %54 : vector<8x768xf32>
    %c0_56 = arith.constant 0 : index
    %c0_57 = arith.constant 0 : index
    %77 = vector.load %arg5[%c0_56, %c0_57] : memref<8x768xf32, #tpu.memory_space<vmem>>, vector<8x768xf32>
    %78 = arith.mulf %68, %77 : vector<8x768xf32>
    %79 = arith.mulf %61, %76 : vector<8x768xf32>
    %80 = arith.addf %78, %79 : vector<8x768xf32>
    %c0_58 = arith.constant 0 : index
    %c0_59 = arith.constant 0 : index
    %81 = vector.load %arg7[%c0_58, %c0_59] : memref<8x768xf32, #tpu.memory_space<vmem>>, vector<8x768xf32>
    tpu.vector_store %arg7[%c0_58, %c0_59], %80 {strides = array<i32>} : memref<8x768xf32, #tpu.memory_space<vmem>>, vector<8x768xf32>,
    %82 = math.tanh %80 : vector<8x768xf32>
    %83 = arith.mulf %75, %82 : vector<8x768xf32>
    %c0_60 = arith.constant 0 : index
    %c0_61 = arith.constant 0 : index
    %84 = vector.load %arg6[%c0_60, %c0_61] : memref<8x768xf32, #tpu.memory_space<vmem>>, vector<8x768xf32>
    tpu.vector_store %arg6[%c0_60, %c0_61], %83 {strides = array<i32>} : memref<8x768xf32, #tpu.memory_space<vmem>>, vector<8x768xf32>,
    return
  }
  func.func @transform_0(%arg0: i32) -> (i32, i32) {
    %c0_i32 = arith.constant 0 : i32
    %c0_i32_0 = arith.constant 0 : i32
    return %c0_i32, %arg0 : i32, i32
  }
  func.func @transform_1(%arg0: i32) -> (i32, i32) {
    %c1_i32 = arith.constant 1 : i32
    %0 = arith.addi %arg0, %c1_i32 : i32
    %c6_i32 = arith.constant 6 : i32
    %1 = arith.muli %0, %c6_i32 : i32
    %c0_i32 = arith.constant 0 : i32
    %c0_i32_0 = arith.constant 0 : i32
    return %c0_i32, %1 : i32, i32
  }
  func.func @transform_2(%arg0: i32) -> (i32, i32, i32) {
    %c0_i32 = arith.constant 0 : i32
    %c0_i32_0 = arith.constant 0 : i32
    %c0_i32_1 = arith.constant 0 : i32
    %c0_i32_2 = arith.constant 0 : i32
    return %c0_i32, %c0_i32_0, %c0_i32_1 : i32, i32, i32
  }
  func.func @transform_3(%arg0: i32) -> (i32, i32) {
    %c0_i32 = arith.constant 0 : i32
    %c0_i32_0 = arith.constant 0 : i32
    %c0_i32_1 = arith.constant 0 : i32
    return %c0_i32, %c0_i32_0 : i32, i32
  }
  func.func @transform_4(%arg0: i32) -> (i32, i32) {
    %c0_i32 = arith.constant 0 : i32
    %c0_i32_0 = arith.constant 0 : i32
    return %c0_i32, %arg0 : i32, i32
  }
  func.func @transform_5(%arg0: i32) -> (i32, i32) {
    %c0_i32 = arith.constant 0 : i32
    %c0_i32_0 = arith.constant 0 : i32
    return %c0_i32, %arg0 : i32, i32
  }
  func.func @transform_6(%arg0: i32) -> (i32, i32) {
    %c0_i32 = arith.constant 0 : i32
    %c0_i32_0 = arith.constant 0 : i32
    return %c0_i32, %arg0 : i32, i32
  }
}

</mosaic_0001>

<bundles_post_ra>
// kernel: convlstm_cell_forward.1
= control target key start
LH: loop header
LB: loop body
LE: loop exit
PB: predicated region body
PF: predicated region fallthrough
CT: control target
= control target key end

     0   :  { %v2736_v8 = vmov 0   ;;  %vm196_vm0 = vcmask 1045504   ;;  %vm189_vm1 = vcmask 97280   ;;  %s2738_s16 = smov 126   ;;  %s2739_s17 = smov 110   ;;  %vm440_vm2 = vcmask 1039360   ;;  %s3477_s0 = inlined_call_operand.vmem [shape: bf16[12,896], index: 0, kind: input, shape index: {}, may-alias: {0,1}]   ;;  %s3478_s1 = inlined_call_operand.vmem [shape: bf16[12,896], index: 1, kind: input, shape index: {}, may-alias: {0,1}]   ;;  %s3479_s2 = inlined_call_operand.vmem [shape: bf16[9,32,12], index: 2, kind: input, shape index: {}]   ;;  %s3480_s3 = inlined_call_operand.vmem [shape: f32[32,1], index: 3, kind: input, shape index: {}]   ;;  %s3481_s4 = inlined_call_operand.vmem [shape: f32[8,768], index: 4, kind: input, shape index: {}, may-alias: {4,6}]   ;;  %s3482_s5 = inlined_call_operand.vmem [shape: f32[8,768], index: 5, kind: output, shape index: {0}]   ;;  %s3483_s6 = inlined_call_operand.vmem [shape: f32[8,768], index: 6, kind: output, shape index: {1}, may-alias: {4,6}]  }
   0x1   :  { %v28_v0 = vld [vmem:[%s3477_s0 + $0x8] sm:$0xff]  ;;  %v26_v2 = vld [vmem:[%s3477_s0] sm:$0xff]  ;;  %v30_v4 = vld [vmem:[%s3477_s0 + $0x10] sm:$0xff]  ;;  %257 = vmatprep.mubr.bf16.mxu1 %v2736_v8  ;;  %247 = vmatprep.mubr.bf16.mxu0 %v2736_v8  ;;  %s2740_s18 = smov 109   ;;  %s2741_s19 = smov 108   ;;  %vm683_vm3 = vcmask 1031168  }
   0x2   :  { %v34_v1 = vld [vmem:[%s3477_s0 + $0x24] sm:$0xff]  ;;  %v32_v3 = vld [vmem:[%s3477_s0 + $0x1c] sm:$0xff]  ;;  %v36_v5 = vld [vmem:[%s3477_s0 + $0x2c] sm:$0xff]  ;;  %2656 = vset.pattern.permute.xlu1 %v2736_v8  ;;  %2655 = vset.pattern.permute.xlu0 %v2736_v8  ;;  %s2737_s0 = smov 127   ;;  %s2742_s20 = smov 92   ;;  %vm926_vm4 = vcmask 900096  }
   0x3   :  { %35 = vst [vmem:[#allocation3 + $0x18] sm:$0xff] %v34_v1  ;;  %33 = vst [vmem:[#allocation3] sm:$0xff] %v32_v3  ;;  %v2498_v6 = vld [vmem:[%s3478_s1 + $0x18] sm:$0xf]  ;;  %v2499_v7 = vld [vmem:[%s3478_s1 + $0x34] sm:$0xf] }
   0x4   :  { %37 = vst [vmem:[#allocation3 + $0x20] sm:$0xff] %v36_v5  ;;  %64 = vst [vmem:[#allocation4] sm:$0xf] %v2498_v6  ;;  %v2658_v31 = vld [vmem:[%s3479_s2 + $0x8] sm:$0xff]   ;;  %v2659_v32 = vld [vmem:[%s3479_s2] sm:$0xff]   ;;  %s2743_s21 = smov 91  }
   0x5   :  { %66 = vst [vmem:[#allocation4 + $0x4] sm:$0xf] %v2499_v7  ;;  %s2744_s22 = smov 90   ;;  %v132_v38 = vld [vmem:[%s3480_s3 + $0x8] sm:$0xff]  ;;  %v131_v39 = vld [vmem:[%s3480_s3] sm:$0xff]  ;;  %v134_v40 = vld [vmem:[%s3480_s3 + $0x18] sm:$0xff] }
   0x6   :  { %v133_v42 = vld [vmem:[%s3480_s3 + $0x10] sm:$0xff]  ;;  %v2661_v60 = vld [vmem:[%s3479_s2 + $0x18] sm:$0xff]   ;;  %vm1169_vm5 = vcmask 891904   ;;  %vm1412_vm6 = vcmask 883712   ;;  %vm1655_vm7 = vcmask 752640   ;;  %vm1898_vm8 = vcmask 744448  }
   0x7   :  { %v2660_v49 = vld [vmem:[%s3479_s2 + $0x10] sm:$0xff]   ;;  %vm2141_vm9 = vcmask 736256  }
   0xa   :  { %v109_v9 = vld [vmem:[#allocation3 + $0x18] sm:$0x33]  ;;  %v108_v10 = vld [vmem:[#allocation3] sm:$0x33] }
   0xb   :  { %115 = vst [vmem:[#allocation2 + $0x24] sm:$0x33] %v109_v9  ;;  %v110_v11 = vld [vmem:[#allocation3 + $0x20] sm:$0x33]  ;;  %114 = vst [vmem:[#allocation2 + $0x1c] sm:$0x33] %v108_v10 }
   0xc   :  { %116 = vst [vmem:[#allocation2 + $0x2c] sm:$0x33] %v110_v11  ;;  %v117_v12 = vld [vmem:[#allocation4] sm:$0xf]  ;;  %v118_v13 = vld [vmem:[#allocation4 + $0x4] sm:$0x3] }
   0xd   :  { %119 = vst [vmem:[#allocation2 + $0x18] sm:$0xf] %v117_v12  ;;  %120 = vst [vmem:[#allocation2 + $0x34] sm:$0x3] %v118_v13  ;;  %v2662_v12 = vld [vmem:[%s3479_s2 + $0x20] sm:$0xff]  }
  0x12   :  { %v384_v14 = vld [vmem:[#allocation2 + $0x24] sm:$0x33]  ;;  %v383_v17 = vld [vmem:[#allocation2 + $0x1c] sm:$0x33] }
  0x13   :  { %v129_v15 = vld [vmem:[#allocation2 + $0x24] sm:$0x33]  ;;  %v2808_v16 = vcombine.low %v28_v0, %v384_v14  ;;  %v128_v18 = vld [vmem:[#allocation2 + $0x1c] sm:$0x33]  ;;  %v2810_v19 = vcombine.low %v26_v2, %v383_v17  ;;  %v2812_v20 = vcombine.high %v28_v0, %v384_v14  ;;  %v130_v21 = vld [vmem:[#allocation2 + $0x2c] sm:$0x33]  ;;  %v2818_v27 = vcombine.high %v26_v2, %v383_v17 }
  0x14   :  { %v385_v22 = vld [vmem:[#allocation2 + $0x2c] sm:$0x33]  ;;  %v2503_v23 = vcombine.high %v26_v2, %v128_v18  ;;  %v2502_v24 = vcombine.low %v26_v2, %v128_v18  ;;  %v2505_v25 = vcombine.high %v28_v0, %v129_v15  ;;  %v2504_v26 = vcombine.low %v28_v0, %v129_v15  ;;  %v2848_v37 = vld [vmem:[#allocation2 + $0x18] ss:$28 sps:$4 sm:$0x3f]  }
  0x15   :  { %430 = vrot.lane.b32.xlu1 %v2808_v16, %s2737_s0  ;;  %426 = vrot.lane.b32.xlu0 %v2810_v19, %s2737_s0  ;;  %v2507_v28 = vcombine.high %v30_v4, %v130_v21  ;;  %v2506_v29 = vcombine.low %v30_v4, %v130_v21  ;;  %v2831_v33 = vcombine.high %v30_v4, %v385_v22 }
  0x16   :  { %2644 = vmatprep.subr.msk.bf16.mxu1 %vm196_vm0, %v2503_v23  ;;  %v198_v30 = vsel %vm196_vm0, %v2502_v24, 0  ;;  %2508 = vmatprep.subr.msk.bf16.mxu0 %vm196_vm0, %v2503_v23  ;;  %v204_v34 = vsel %vm196_vm0, %v2504_v26, 0  ;;  %v2837_v35 = vcombine.low %v30_v4, %v385_v22 }
  0x17   :  { %2645 = vmatpush1.bf16.msra.mxu1 %v198_v30  ;;  %230 = vmatpush1.bf16.msra.mxu0 %v198_v30  ;;  %v210_v36 = vsel %vm196_vm0, %v2506_v29, 0 }
  0x18   :  { %2511 = vmatprep.subr.msk.bf16.mxu1 %vm196_vm0, %v2505_v25  ;;  %2514 = vmatprep.subr.msk.bf16.mxu0 %vm196_vm0, %v2507_v28 }
  0x19   :  { %432 = vrot.lane.b32.xlu1 %v2812_v20, %s2737_s0  ;;  %428 = vrot.lane.b32.xlu0 %v2818_v27, %s2737_s0 }
  0x1a   :  { %2510 = vmatmul.mubr.msk.bf16.vlgmr.msra.gmra.mxu1 %vm189_vm1, %v2658_v31  ;;  %2509 = vmatmul.mubr.msk.bf16.vlgmr.msra.gmra.mxu0 %vm189_vm1, %v2659_v32 }
  0x1b   :  { %283 = vmatpush1.bf16.msra.mxu1 %v204_v34  ;;  %300 = vmatprep.mubr.bf16.mxu1 %v2736_v8  ;;  %v2664_v34 = vld [vmem:[%s3479_s2 + $0x30] sm:$0xff]  }
  0x1c   :  { %336 = vmatpush1.bf16.msra.mxu0 %v210_v36  ;;  %353 = vmatprep.mubr.bf16.mxu0 %v2736_v8 }
  0x1d   :  { %436 = vrot.lane.b32.xlu1 %v2831_v33, %s2737_s0  ;;  %434 = vrot.lane.b32.xlu0 %v2837_v35, %s2737_s0 }
  0x21   :  { %669 = vrot.lane.b32.xlu1 %v2810_v19, %s2738_s16  ;;  %438 = vrot.lane.b32.xlu0 %v2848_v37, %s2737_s0 }
  0x22   :  { %2512 = vmatmul.mubr.msk.bf16.vlgmr.msra.gmra.mxu1 %vm189_vm1, %v2659_v32  ;;  %2515 = vmatmul.mubr.msk.bf16.vlgmr.msra.gmra.mxu0 %vm189_vm1, %v2659_v32 }
  0x23   :  { %310 = vmatprep.mubr.bf16.mxu1 %v2736_v8  ;;  %363 = vmatprep.mubr.bf16.mxu0 %v2736_v8 }
  0x25   :  { %673 = vrot.lane.b32.xlu1 %v2808_v16, %s2738_s16  ;;  %671 = vrot.lane.b32.xlu0 %v2818_v27, %s2738_s16 }
  0x29   :  { %677 = vrot.lane.b32.xlu1 %v2837_v35, %s2738_s16  ;;  %675 = vrot.lane.b32.xlu0 %v2812_v20, %s2738_s16 }
  0x2a   :  { %2513 = vmatmul.mubr.msk.bf16.gmra.mxu1 %vm189_vm1, %v2658_v31  ;;  %2516 = vmatmul.mubr.msk.bf16.gmra.mxu0 %vm189_vm1, %v2658_v31 }
  0x2b   :  { %503 = vmatprep.mubr.bf16.mxu1 %v2736_v8  ;;  %556 = vmatprep.mubr.bf16.mxu0 %v2736_v8 }
  0x2d   :  { %681 = vrot.lane.b32.xlu1 %v2848_v37, %s2738_s16  ;;  %679 = vrot.lane.b32.xlu0 %v2831_v33, %s2738_s16 }
  0x31   :  { %914 = vrot.lane.b32.xlu1 %v2818_v27, %s2739_s17  ;;  %912 = vrot.lane.b32.xlu0 %v2810_v19, %s2739_s17 }
  0x35   :  { %918 = vrot.lane.b32.xlu1 %v2812_v20, %s2739_s17  ;;  %916 = vrot.lane.b32.xlu0 %v2808_v16, %s2739_s17 }
  0x39   :  { %922 = vrot.lane.b32.xlu1 %v2831_v33, %s2739_s17  ;;  %920 = vrot.lane.b32.xlu0 %v2837_v35, %s2739_s17 }
  0x3d   :  { %1155 = vrot.lane.b32.xlu1 %v2810_v19, %s2740_s18  ;;  %924 = vrot.lane.b32.xlu0 %v2848_v37, %s2739_s17 }
  0x41   :  { %1159 = vrot.lane.b32.xlu1 %v2808_v16, %s2740_s18  ;;  %1157 = vrot.lane.b32.xlu0 %v2818_v27, %s2740_s18 }
  0x45   :  { %1163 = vrot.lane.b32.xlu1 %v2837_v35, %s2740_s18  ;;  %1161 = vrot.lane.b32.xlu0 %v2812_v20, %s2740_s18 }
  0x49   :  { %1167 = vrot.lane.b32.xlu1 %v2848_v37, %s2740_s18  ;;  %1165 = vrot.lane.b32.xlu0 %v2831_v33, %s2740_s18 }
  0x4d   :  { %1400 = vrot.lane.b32.xlu1 %v2818_v27, %s2741_s19  ;;  %1398 = vrot.lane.b32.xlu0 %v2810_v19, %s2741_s19 }
  0x51   :  { %1404 = vrot.lane.b32.xlu1 %v2812_v20, %s2741_s19  ;;  %1402 = vrot.lane.b32.xlu0 %v2808_v16, %s2741_s19 }
  0x55   :  { %1408 = vrot.lane.b32.xlu1 %v2831_v33, %s2741_s19  ;;  %1406 = vrot.lane.b32.xlu0 %v2837_v35, %s2741_s19 }
  0x59   :  { %1641 = vrot.lane.b32.xlu1 %v2810_v19, %s2742_s20  ;;  %1410 = vrot.lane.b32.xlu0 %v2848_v37, %s2741_s19 }
  0x5d   :  { %1645 = vrot.lane.b32.xlu1 %v2808_v16, %s2742_s20  ;;  %1643 = vrot.lane.b32.xlu0 %v2818_v27, %s2742_s20 }
  0x61   :  { %1649 = vrot.lane.b32.xlu1 %v2837_v35, %s2742_s20  ;;  %1647 = vrot.lane.b32.xlu0 %v2812_v20, %s2742_s20 }
  0x65   :  { %1653 = vrot.lane.b32.xlu1 %v2848_v37, %s2742_s20  ;;  %1651 = vrot.lane.b32.xlu0 %v2831_v33, %s2742_s20 }
  0x69   :  { %1886 = vrot.lane.b32.xlu1 %v2818_v27, %s2743_s21  ;;  %1884 = vrot.lane.b32.xlu0 %v2810_v19, %s2743_s21 }
  0x6d   :  { %1890 = vrot.lane.b32.xlu1 %v2812_v20, %s2743_s21  ;;  %1888 = vrot.lane.b32.xlu0 %v2808_v16, %s2743_s21 }
  0x71   :  { %1894 = vrot.lane.b32.xlu1 %v2831_v33, %s2743_s21  ;;  %1892 = vrot.lane.b32.xlu0 %v2837_v35, %s2743_s21 }
  0x75   :  { %2127 = vrot.lane.b32.xlu1 %v2810_v19, %s2744_s22  ;;  %1896 = vrot.lane.b32.xlu0 %v2848_v37, %s2743_s21  ;;  %v2663_v19 = vld [vmem:[%s3479_s2 + $0x28] sm:$0xff]  }
  0x79   :  { %2131 = vrot.lane.b32.xlu1 %v2808_v16, %s2744_s22  ;;  %2129 = vrot.lane.b32.xlu0 %v2818_v27, %s2744_s22 }
  0x7d   :  { %2135 = vrot.lane.b32.xlu1 %v2837_v35, %s2744_s22  ;;  %2133 = vrot.lane.b32.xlu0 %v2812_v20, %s2744_s22 }
  0x81   :  { %2139 = vrot.lane.b32.xlu1 %v2848_v37, %s2744_s22  ;;  %2137 = vrot.lane.b32.xlu0 %v2831_v33, %s2744_s22 }
  0x85   :  { %142 = vperm.xlu1 %2656, %v132_v38   ;;  %137 = vperm.xlu0 %2655, %v131_v39  }
  0x87   :  { %v431_v41 = vpop.permute.xlu1 %430  ;;  %v427_v43 = vpop.permute.xlu0 %426 }
  0x89   :  { %152 = vperm.xlu1 %2656, %v134_v40   ;;  %147 = vperm.xlu0 %2655, %v133_v42  }
  0x8b   :  { %v433_v44 = vpop.permute.xlu1 %432  ;;  %v429_v45 = vpop.permute.xlu0 %428 }
  0x8c   :  { %v441_v46 = vsel %vm440_vm2, %v427_v43, %v429_v45  ;;  %v442_v47 = vsel %vm440_vm2, %v429_v45, %v431_v41  ;;  %v443_v50 = vsel %vm440_vm2, %v431_v41, %v433_v44 }
  0x8d   :  { %v454_v48 = vsel %vm196_vm0, %v441_v46, 0  ;;  %2530 = vmatprep.subr.msk.bf16.mxu1 %vm196_vm0, %v442_v47  ;;  %v460_v54 = vsel %vm196_vm0, %v443_v50, 0 }
  0x8e   :  { %486 = vmatpush1.bf16.msra.mxu1 %v454_v48 }
  0x8f   :  { %v437_v51 = vpop.permute.xlu1 %436  ;;  %v435_v52 = vpop.permute.xlu0 %434 }
  0x90   :  { %v444_v53 = vsel %vm440_vm2, %v433_v44, %v435_v52  ;;  %v445_v55 = vsel %vm440_vm2, %v435_v52, %v437_v51  ;;  %v2665_v44 = vld [vmem:[%s3479_s2 + $0x38] sm:$0xff]   ;;  %v2666_v52 = vld [vmem:[%s3479_s2 + $0x40] sm:$0xff]  }
  0x91   :  { %2531 = vmatmul.mubr.msk.bf16.vlgmr.msra.gmra.mxu1 %vm189_vm1, %v2660_v49  ;;  %2533 = vmatprep.subr.msk.bf16.mxu0 %vm196_vm0, %v444_v53  ;;  %v466_v59 = vsel %vm196_vm0, %v445_v55, 0 }
  0x92   :  { %539 = vmatpush1.bf16.msra.mxu0 %v460_v54  ;;  %513 = vmatprep.mubr.bf16.mxu1 %v2736_v8 }
  0x93   :  { %v670_v56 = vpop.permute.xlu1 %669  ;;  %v439_v57 = vpop.permute.xlu0 %438 }
  0x94   :  { %v446_v58 = vsel %vm440_vm2, %v437_v51, %v439_v57 }
  0x95   :  { %2534 = vmatmul.mubr.msk.bf16.vlgmr.msra.gmra.mxu0 %vm189_vm1, %v2660_v49  ;;  %2536 = vmatprep.subr.msk.bf16.mxu1 %vm196_vm0, %v446_v58  ;;  %v2667_v58 = vld [vmem:[%s3479_s2 + $0x48] sm:$0xff]  }
  0x96   :  { %592 = vmatpush1.bf16.msra.mxu1 %v466_v59  ;;  %566 = vmatprep.mubr.bf16.mxu0 %v2736_v8 }
  0x97   :  { %v674_v61 = vpop.permute.xlu1 %673  ;;  %v672_v62 = vpop.permute.xlu0 %671 }
  0x98   :  { %v684_v63 = vsel %vm683_vm3, %v670_v56, %v672_v62  ;;  %v685_v0 = vsel %vm683_vm3, %v672_v62, %v674_v61 }
  0x99   :  { %2532 = vmatmul.mubr.msk.bf16.gmra.mxu1 %vm189_vm1, %v2661_v60  ;;  %v697_v1 = vsel %vm196_vm0, %v684_v63, 0  ;;  %2545 = vmatprep.subr.msk.bf16.mxu0 %vm196_vm0, %v685_v0 }
  0x9a   :  { %729 = vmatpush1.bf16.msra.mxu0 %v697_v1  ;;  %609 = vmatprep.mubr.bf16.mxu1 %v2736_v8 }
  0x9b   :  { %v678_v2 = vpop.permute.xlu1 %677  ;;  %v676_v3 = vpop.permute.xlu0 %675 }
  0x9c   :  { %v686_v4 = vsel %vm683_vm3, %v674_v61, %v676_v3  ;;  %v687_v5 = vsel %vm683_vm3, %v676_v3, %v678_v2 }
  0x9d   :  { %2535 = vmatmul.mubr.msk.bf16.gmra.mxu0 %vm189_vm1, %v2661_v60  ;;  %2548 = vmatprep.subr.msk.bf16.mxu1 %vm196_vm0, %v687_v5  ;;  %v703_v7 = vsel %vm196_vm0, %v686_v4, 0 }
  0x9e   :  { %746 = vmatprep.mubr.bf16.mxu0 %v2736_v8 }
  0x9f   :  { %v682_v6 = vpop.permute.xlu1 %681  ;;  %v680_v9 = vpop.permute.xlu0 %679 }
  0xa0   :  { %v688_v10 = vsel %vm683_vm3, %v678_v2, %v680_v9  ;;  %v689_v11 = vsel %vm683_vm3, %v680_v9, %v682_v6  ;;  %v2668_v6 = vld [vmem:[%s3479_s2 + $0x50] sm:$0xff]  }
  0xa1   :  { %2537 = vmatmul.mubr.msk.bf16.vlgmr.msra.gmra.mxu1 %vm189_vm1, %v2660_v49  ;;  %2551 = vmatprep.subr.msk.bf16.mxu0 %vm196_vm0, %v689_v11  ;;  %v709_v14 = vsel %vm196_vm0, %v688_v10, 0 }
  0xa2   :  { %782 = vmatpush1.bf16.msra.mxu1 %v703_v7  ;;  %619 = vmatprep.mubr.bf16.mxu1 %v2736_v8 }
  0xa3   :  { %v915_v13 = vpop.permute.xlu1 %914  ;;  %v913_v15 = vpop.permute.xlu0 %912 }
  0xa4   :  { %v927_v22 = vsel %vm926_vm4, %v913_v15, %v915_v13 }
  0xa5   :  { %2546 = vmatmul.mubr.msk.bf16.vlgmr.msra.gmra.mxu0 %vm189_vm1, %v2662_v12  ;;  %v940_v25 = vsel %vm196_vm0, %v927_v22, 0 }
  0xa6   :  { %756 = vmatprep.mubr.bf16.mxu0 %v2736_v8  ;;  %835 = vmatpush1.bf16.msra.mxu0 %v709_v14 }
  0xa7   :  { %v919_v16 = vpop.permute.xlu1 %918  ;;  %v917_v17 = vpop.permute.xlu0 %916 }
  0xa8   :  { %v928_v18 = vsel %vm926_vm4, %v915_v13, %v917_v17  ;;  %v929_v27 = vsel %vm926_vm4, %v917_v17, %v919_v16  ;;  %v2669_v17 = vld [vmem:[%s3479_s2 + $0x58] sm:$0xff]  }
  0xa9   :  { %2538 = vmatmul.mubr.msk.bf16.gmra.mxu1 %vm189_vm1, %v2661_v60  ;;  %2560 = vmatprep.subr.msk.bf16.mxu1 %vm196_vm0, %v928_v18  ;;  %v946_v30 = vsel %vm196_vm0, %v929_v27, 0 }
  0xaa   :  { %799 = vmatprep.mubr.bf16.mxu1 %v2736_v8 }
  0xab   :  { %v923_v20 = vpop.permute.xlu1 %922  ;;  %v921_v21 = vpop.permute.xlu0 %920 }
  0xac   :  { %v930_v23 = vsel %vm926_vm4, %v919_v16, %v921_v21  ;;  %v931_v33 = vsel %vm926_vm4, %v921_v21, %v923_v20 }
  0xad   :  { %2547 = vmatmul.mubr.msk.bf16.gmra.mxu0 %vm189_vm1, %v2663_v19  ;;  %2563 = vmatprep.subr.msk.bf16.mxu0 %vm196_vm0, %v930_v23  ;;  %v952_v37 = vsel %vm196_vm0, %v931_v33, 0 }
  0xae   :  { %852 = vmatprep.mubr.bf16.mxu0 %v2736_v8 }
  0xaf   :  { %v1156_v24 = vpop.permute.xlu1 %1155  ;;  %v925_v26 = vpop.permute.xlu0 %924 }
  0xb0   :  { %v932_v28 = vsel %vm926_vm4, %v923_v20, %v925_v26 }
  0xb1   :  { %2549 = vmatmul.mubr.msk.bf16.vlgmr.msra.gmra.mxu1 %vm189_vm1, %v2662_v12 }
  0xb2   :  { %809 = vmatprep.mubr.bf16.mxu1 %v2736_v8  ;;  %972 = vmatpush1.bf16.msra.mxu1 %v940_v25  ;;  %v2670_v25 = vld [vmem:[%s3479_s2 + $0x60] sm:$0xff]  }
  0xb3   :  { %v1160_v29 = vpop.permute.xlu1 %1159  ;;  %2566 = vmatprep.subr.msk.bf16.mxu1 %vm196_vm0, %v932_v28  ;;  %v1158_v31 = vpop.permute.xlu0 %1157 }
  0xb4   :  { %v1171_v32 = vsel %vm1169_vm5, %v1158_v31, %v1160_v29  ;;  %v1170_v38 = vsel %vm1169_vm5, %v1156_v24, %v1158_v31  ;;  %v2671_v31 = vld [vmem:[%s3479_s2 + $0x68] sm:$0xff]  }
  0xb5   :  { %2552 = vmatmul.mubr.msk.bf16.vlgmr.msra.gmra.mxu0 %vm189_vm1, %v2662_v12  ;;  %v1183_v42 = vsel %vm196_vm0, %v1170_v38, 0 }
  0xb6   :  { %862 = vmatprep.mubr.bf16.mxu0 %v2736_v8  ;;  %1025 = vmatpush1.bf16.msra.mxu0 %v946_v30 }
  0xb7   :  { %2575 = vmatprep.subr.msk.bf16.mxu0 %vm196_vm0, %v1171_v32  ;;  %v1164_v35 = vpop.permute.xlu1 %1163  ;;  %v1162_v36 = vpop.permute.xlu0 %1161 }
  0xb8   :  { %v1173_v39 = vsel %vm1169_vm5, %v1162_v36, %v1164_v35  ;;  %v1172_v48 = vsel %vm1169_vm5, %v1160_v29, %v1162_v36 }
  0xb9   :  { %2550 = vmatmul.mubr.msk.bf16.gmra.mxu1 %vm189_vm1, %v2663_v19  ;;  %v1189_v49 = vsel %vm196_vm0, %v1172_v48, 0 }
  0xba   :  { %989 = vmatprep.mubr.bf16.mxu1 %v2736_v8 }
  0xbb   :  { %v1168_v40 = vpop.permute.xlu1 %1167  ;;  %v1166_v41 = vpop.permute.xlu0 %1165 }
  0xbc   :  { %v1175_v43 = vsel %vm1169_vm5, %v1166_v41, %v1168_v40  ;;  %v1174_v50 = vsel %vm1169_vm5, %v1164_v35, %v1166_v41 }
  0xbd   :  { %2553 = vmatmul.mubr.msk.bf16.gmra.mxu0 %vm189_vm1, %v2663_v19  ;;  %v1195_v55 = vsel %vm196_vm0, %v1174_v50, 0 }
  0xbe   :  { %1042 = vmatprep.mubr.bf16.mxu0 %v2736_v8 }
  0xbf   :  { %v1399_v45 = vpop.permute.xlu0 %1398  ;;  %v1401_v46 = vpop.permute.xlu1 %1400 }
  0xc0   :  { %v1413_v60 = vsel %vm1412_vm6, %v1399_v45, %v1401_v46 }
  0xc1   :  { %2561 = vmatmul.mubr.msk.bf16.vlgmr.msra.gmra.mxu1 %vm189_vm1, %v2664_v34  ;;  %v1426_v62 = vsel %vm196_vm0, %v1413_v60, 0 }
  0xc2   :  { %1078 = vmatpush1.bf16.msra.mxu1 %v952_v37  ;;  %999 = vmatprep.mubr.bf16.mxu1 %v2736_v8 }
  0xc3   :  { %2578 = vmatprep.subr.msk.bf16.mxu1 %vm196_vm0, %v1173_v39  ;;  %v1403_v47 = vpop.permute.xlu0 %1402  ;;  %v1405_v53 = vpop.permute.xlu1 %1404 }
  0xc4   :  { %v1414_v51 = vsel %vm1412_vm6, %v1401_v46, %v1403_v47  ;;  %v1415_v63 = vsel %vm1412_vm6, %v1403_v47, %v1405_v53 }
  0xc5   :  { %2564 = vmatmul.mubr.msk.bf16.vlgmr.msra.gmra.mxu0 %vm189_vm1, %v2664_v34  ;;  %v1432_v3 = vsel %vm196_vm0, %v1415_v63, 0 }
  0xc6   :  { %1052 = vmatprep.mubr.bf16.mxu0 %v2736_v8  ;;  %1215 = vmatpush1.bf16.msra.mxu0 %v1183_v42 }
  0xc7   :  { %2581 = vmatprep.subr.msk.bf16.mxu0 %vm196_vm0, %v1175_v43  ;;  %v1407_v54 = vpop.permute.xlu0 %1406  ;;  %v1409_v57 = vpop.permute.xlu1 %1408  ;;  %v2672_v43 = vld [vmem:[%s3479_s2 + $0x70] sm:$0xff]  }
  0xc8   :  { %v1416_v56 = vsel %vm1412_vm6, %v1405_v53, %v1407_v54  ;;  %v1417_v5 = vsel %vm1412_vm6, %v1407_v54, %v1409_v57  ;;  %v2673_v54 = vld [vmem:[%s3479_s2 + $0x78] sm:$0xff]  }
  0xc9   :  { %2562 = vmatmul.mubr.msk.bf16.gmra.mxu1 %vm189_vm1, %v2665_v44  ;;  %v1438_v10 = vsel %vm196_vm0, %v1417_v5, 0 }
  0xca   :  { %1095 = vmatprep.mubr.bf16.mxu1 %v2736_v8 }
  0xcb   :  { %v1642_v59 = vpop.permute.xlu1 %1641  ;;  %v1411_v61 = vpop.permute.xlu0 %1410 }
  0xcc   :  { %v1418_v0 = vsel %vm1412_vm6, %v1409_v57, %v1411_v61 }
  0xcd   :  { %2565 = vmatmul.mubr.msk.bf16.gmra.mxu0 %vm189_vm1, %v2665_v44 }
  0xce   :  { %1232 = vmatprep.mubr.bf16.mxu0 %v2736_v8 }
  0xcf   :  { %v1646_v1 = vpop.permute.xlu1 %1645  ;;  %v1644_v2 = vpop.permute.xlu0 %1643 }
  0xd0   :  { %v1657_v4 = vsel %vm1655_vm7, %v1644_v2, %v1646_v1  ;;  %v1656_v11 = vsel %vm1655_vm7, %v1642_v59, %v1644_v2 }
  0xd1   :  { %2567 = vmatmul.mubr.msk.bf16.vlgmr.msra.gmra.mxu1 %vm189_vm1, %v2664_v34  ;;  %v1669_v15 = vsel %vm196_vm0, %v1656_v11, 0 }
  0xd2   :  { %1268 = vmatpush1.bf16.msra.mxu1 %v1189_v49  ;;  %1105 = vmatprep.mubr.bf16.mxu1 %v2736_v8 }
  0xd3   :  { %2590 = vmatprep.subr.msk.bf16.mxu1 %vm196_vm0, %v1414_v51  ;;  %v1650_v7 = vpop.permute.xlu1 %1649  ;;  %v1648_v9 = vpop.permute.xlu0 %1647 }
  0xd4   :  { %v1659_v12 = vsel %vm1655_vm7, %v1648_v9, %v1650_v7  ;;  %v1658_v21 = vsel %vm1655_vm7, %v1646_v1, %v1648_v9 }
  0xd5   :  { %2576 = vmatmul.mubr.msk.bf16.vlgmr.msra.gmra.mxu0 %vm189_vm1, %v2666_v52  ;;  %v1675_v22 = vsel %vm196_vm0, %v1658_v21, 0 }
  0xd6   :  { %1242 = vmatprep.mubr.bf16.mxu0 %v2736_v8  ;;  %1321 = vmatpush1.bf16.msra.mxu0 %v1195_v55 }
  0xd7   :  { %2593 = vmatprep.subr.msk.bf16.mxu0 %vm196_vm0, %v1416_v56  ;;  %v1654_v13 = vpop.permute.xlu1 %1653  ;;  %v1652_v14 = vpop.permute.xlu0 %1651 }
  0xd8   :  { %v1661_v16 = vsel %vm1655_vm7, %v1652_v14, %v1654_v13  ;;  %v1660_v23 = vsel %vm1655_vm7, %v1650_v7, %v1652_v14 }
  0xd9   :  { %2568 = vmatmul.mubr.msk.bf16.gmra.mxu1 %vm189_vm1, %v2665_v44  ;;  %v1681_v28 = vsel %vm196_vm0, %v1660_v23, 0 }
  0xda   :  { %1285 = vmatprep.mubr.bf16.mxu1 %v2736_v8  ;;  %v3123_v49 = vpop.f32.mrf.mxu1  ;;  %v249_v56 = vpop.f32.mrf.mxu0 }
  0xdb   :  { %v1885_v18 = vpop.permute.xlu0 %1884  ;;  %v1887_v19 = vpop.permute.xlu1 %1886 }
  0xdc   :  { %v1899_v33 = vsel %vm1898_vm8, %v1885_v18, %v1887_v19  ;;  %v3133_v55 = vpop.f32.mrf.mxu1 }
  0xdd   :  { %2577 = vmatmul.mubr.msk.bf16.gmra.mxu0 %vm189_vm1, %v2667_v58  ;;  %v1912_v35 = vsel %vm196_vm0, %v1899_v33, 0 }
  0xde   :  { %1338 = vmatprep.mubr.bf16.mxu0 %v2736_v8  ;;  %v3138_v57 = vpop.f32.mrf.mxu1 }
  0xdf   :  { %v1889_v20 = vpop.permute.xlu0 %1888  ;;  %v1891_v26 = vpop.permute.xlu1 %1890 }
  0xe0   :  { %v1900_v24 = vsel %vm1898_vm8, %v1887_v19, %v1889_v20  ;;  %v1901_v36 = vsel %vm1898_vm8, %v1889_v20, %v1891_v26  ;;  %v3144_v61 = vpop.f32.mrf.mxu1 }
  0xe1   :  { %2579 = vmatmul.mubr.msk.bf16.vlgmr.msra.gmra.mxu1 %vm189_vm1, %v2666_v52  ;;  %v1918_v40 = vsel %vm196_vm0, %v1901_v36, 0 }
  0xe2   :  { %1295 = vmatprep.mubr.bf16.mxu1 %v2736_v8  ;;  %1458 = vmatpush1.bf16.msra.mxu1 %v1426_v62  ;;  %v302_v2 = vpop.f32.mrf.mxu1 }
  0xe3   :  { %2596 = vmatprep.subr.msk.bf16.mxu1 %vm196_vm0, %v1418_v0  ;;  %v1893_v27 = vpop.permute.xlu0 %1892  ;;  %v1895_v30 = vpop.permute.xlu1 %1894  ;;  %v2674_v0 = vld [vmem:[%s3479_s2 + $0x80] sm:$0xff]  }
  0xe4   :  { %v1902_v29 = vsel %vm1898_vm8, %v1891_v26, %v1893_v27  ;;  %v1903_v42 = vsel %vm1898_vm8, %v1893_v27, %v1895_v30 }
  0xe5   :  { %2582 = vmatmul.mubr.msk.bf16.vlgmr.msra.gmra.mxu0 %vm189_vm1, %v2666_v52  ;;  %v1924_v46 = vsel %vm196_vm0, %v1903_v42, 0 }
  0xe6   :  { %1348 = vmatprep.mubr.bf16.mxu0 %v2736_v8  ;;  %1511 = vmatpush1.bf16.msra.mxu0 %v1432_v3 }
  0xe7   :  { %2605 = vmatprep.subr.msk.bf16.mxu0 %vm196_vm0, %v1657_v4  ;;  %v2128_v32 = vpop.permute.xlu1 %2127  ;;  %v1897_v34 = vpop.permute.xlu0 %1896 }
  0xe8   :  { %v1904_v37 = vsel %vm1898_vm8, %v1895_v30, %v1897_v34  ;;  %v304_v4 = vpop.f32.mrf.mxu1 }
  0xe9   :  { %2580 = vmatmul.mubr.msk.bf16.gmra.mxu1 %vm189_vm1, %v2667_v58 }
  0xea   :  { %1475 = vmatprep.mubr.bf16.mxu1 %v2736_v8  ;;  %v306_v7 = vpop.f32.mrf.mxu1 }
  0xeb   :  { %v2132_v38 = vpop.permute.xlu1 %2131  ;;  %v2130_v39 = vpop.permute.xlu0 %2129 }
  0xec   :  { %v2143_v41 = vsel %vm2141_vm9, %v2130_v39, %v2132_v38  ;;  %v2142_v47 = vsel %vm2141_vm9, %v2128_v32, %v2130_v39 }
  0xed   :  { %2583 = vmatmul.mubr.msk.bf16.gmra.mxu0 %vm189_vm1, %v2667_v58  ;;  %v2155_v50 = vsel %vm196_vm0, %v2142_v47, 0  ;;  %v251_v58 = vpop.f32.mrf.mxu0 }
  0xee   :  { %1528 = vmatprep.mubr.bf16.mxu0 %v2736_v8 }
  0xef   :  { %v2136_v44 = vpop.permute.xlu1 %2135  ;;  %v2134_v45 = vpop.permute.xlu0 %2133 }
  0xf0   :  { %v2145_v48 = vsel %vm2141_vm9, %v2134_v45, %v2136_v44  ;;  %v2144_v59 = vsel %vm2141_vm9, %v2132_v38, %v2134_v45  ;;  %v253_v62 = vpop.f32.mrf.mxu0 }
  0xf1   :  { %2591 = vmatmul.mubr.msk.bf16.vlgmr.msra.gmra.mxu1 %vm189_vm1, %v2668_v6  ;;  %v2161_v60 = vsel %vm196_vm0, %v2144_v59, 0 }
  0xf2   :  { %1564 = vmatpush1.bf16.msra.mxu1 %v1438_v10  ;;  %1485 = vmatprep.mubr.bf16.mxu1 %v2736_v8  ;;  %v255_v3 = vpop.f32.mrf.mxu0  ;;  %v308_v10 = vpop.f32.mrf.mxu1 }
  0xf3   :  { %2608 = vmatprep.subr.msk.bf16.mxu1 %vm196_vm0, %v1659_v12  ;;  %v2140_v51 = vpop.permute.xlu1 %2139  ;;  %v2138_v52 = vpop.permute.xlu0 %2137 }
  0xf4   :  { %v2147_v53 = vsel %vm2141_vm9, %v2138_v52, %v2140_v51  ;;  %v2146_v63 = vsel %vm2141_vm9, %v2136_v44, %v2138_v52  ;;  %v3155_v5 = vpop.f32.mrf.mxu0  ;;  %v312_v12 = vpop.f32.mrf.mxu1 }
  0xf5   :  { %2594 = vmatmul.mubr.msk.bf16.vlgmr.msra.gmra.mxu0 %vm189_vm1, %v2668_v6  ;;  %v2167_v1 = vsel %vm196_vm0, %v2146_v63, 0 }
  0xf6   :  { %1538 = vmatprep.mubr.bf16.mxu0 %v2736_v8  ;;  %1701 = vmatpush1.bf16.msra.mxu0 %v1669_v15  ;;  %v3162_v9 = vpop.f32.mrf.mxu0  ;;  %v314_v14 = vpop.f32.mrf.mxu1 }
  0xf7   :  { %2611 = vmatprep.subr.msk.bf16.mxu0 %vm196_vm0, %v1661_v16 }
  0xf8   :  { %v3166_v11 = vpop.f32.mrf.mxu0  ;;  %v316_v16 = vpop.f32.mrf.mxu1 }
  0xf9   :  { %2592 = vmatmul.mubr.msk.bf16.gmra.mxu1 %vm189_vm1, %v2669_v17 }
  0xfa   :  { %1581 = vmatprep.mubr.bf16.mxu1 %v2736_v8  ;;  %v3170_v13 = vpop.f32.mrf.mxu0  ;;  %v3180_v19 = vpop.f32.mrf.mxu1 }
  0xfc   :  { %v3174_v15 = vpop.f32.mrf.mxu0 }
  0xfd   :  { %2595 = vmatmul.mubr.msk.bf16.gmra.mxu0 %vm189_vm1, %v2669_v17 }
  0xfe   :  { %1718 = vmatprep.mubr.bf16.mxu0 %v2736_v8 }
 0x100   :  { %v138_v18 = vpop.permute.xlu0 %137  ;;  %v143_v23 = vpop.permute.xlu1 %142 }
 0x101   :  { %2597 = vmatmul.mubr.msk.bf16.vlgmr.msra.gmra.mxu1 %vm189_vm1, %v2668_v6  ;;  %v2675_v6 = vld [vmem:[%s3479_s2 + $0x88] sm:$0xff]   ;;  %v250_v21 = vadd.f32 %v249_v56, %v138_v18  ;;  %v303_v30 = vadd.f32 %v302_v2, %v138_v18  ;;  %v305_v36 = vadd.f32 %v304_v4, %v138_v18 }
 0x102   :  { %1754 = vmatpush1.bf16.msra.mxu1 %v1675_v22  ;;  %1591 = vmatprep.mubr.bf16.mxu1 %v2736_v8 }
 0x103   :  { %2620 = vmatprep.subr.msk.bf16.mxu1 %vm196_vm0, %v1900_v24 }
 0x104   :  { %v148_v27 = vpop.permute.xlu0 %147  ;;  %v3188_v39 = vpop.permute.xlu1 %152 }
 0x105   :  { %2606 = vmatmul.mubr.msk.bf16.vlgmr.msra.gmra.mxu0 %vm189_vm1, %v2670_v25  ;;  %v260_v42 = vadd.f32 %v3123_v49, %v148_v27  ;;  %v264_v56 = vadd.f32 %v3138_v57, %v3188_v39  ;;  %v358_v57 = vadd.f32 %v3162_v9, %v138_v18 }
 0x106   :  { %1728 = vmatprep.mubr.bf16.mxu0 %v2736_v8  ;;  %1807 = vmatpush1.bf16.msra.mxu0 %v1681_v28 }
 0x107   :  { %2623 = vmatprep.subr.msk.bf16.mxu0 %vm196_vm0, %v1902_v29  ;;  %v254_v29 = vadd.f32 %v253_v62, %v143_v23 }
 0x109   :  { %2598 = vmatmul.mubr.msk.bf16.gmra.mxu1 %vm189_vm1, %v2669_v17  ;;  %v3177_v17 = vpop.f32.mrf.mxu0 }
 0x10a   :  { %1771 = vmatprep.mubr.bf16.mxu1 %v2736_v8 }
 0x10b   :  { %v3182_v20 = vpop.f32.mrf.mxu0 }
 0x10d   :  { %2607 = vmatmul.mubr.msk.bf16.gmra.mxu0 %vm189_vm1, %v2671_v31 }
 0x10e   :  { %1824 = vmatprep.mubr.bf16.mxu0 %v2736_v8 }
 0x111   :  { %2609 = vmatmul.mubr.msk.bf16.vlgmr.msra.gmra.mxu1 %vm189_vm1, %v2670_v25 }
 0x112   :  { %1781 = vmatprep.mubr.bf16.mxu1 %v2736_v8  ;;  %1944 = vmatpush1.bf16.msra.mxu1 %v1912_v35  ;;  %v256_v35 = vadd.f32 %v255_v3, %v143_v23 }
 0x113   :  { %2626 = vmatprep.subr.msk.bf16.mxu1 %vm196_vm0, %v1904_v37 }
 0x115   :  { %2612 = vmatmul.mubr.msk.bf16.vlgmr.msra.gmra.mxu0 %vm189_vm1, %v2670_v25  ;;  %v3184_v25 = vpop.f32.mrf.mxu0 }
 0x116   :  { %1834 = vmatprep.mubr.bf16.mxu0 %v2736_v8  ;;  %1997 = vmatpush1.bf16.msra.mxu0 %v1918_v40 }
 0x117   :  { %2635 = vmatprep.subr.msk.bf16.mxu0 %vm196_vm0, %v2143_v41 }
 0x119   :  { %2610 = vmatmul.mubr.msk.bf16.gmra.mxu1 %vm189_vm1, %v2671_v31 }
 0x11a   :  { %1961 = vmatprep.mubr.bf16.mxu1 %v2736_v8 }
 0x11d   :  { %2613 = vmatmul.mubr.msk.bf16.gmra.mxu0 %vm189_vm1, %v2671_v31 }
 0x11e   :  { %2014 = vmatprep.mubr.bf16.mxu0 %v2736_v8 }
 0x121   :  { %2621 = vmatmul.mubr.msk.bf16.vlgmr.msra.gmra.mxu1 %vm189_vm1, %v2672_v43 }
 0x122   :  { %2050 = vmatpush1.bf16.msra.mxu1 %v1924_v46  ;;  %1971 = vmatprep.mubr.bf16.mxu1 %v2736_v8  ;;  %v309_v46 = vadd.f32 %v308_v10, %v143_v23 }
 0x123   :  { %2638 = vmatprep.subr.msk.bf16.mxu1 %vm196_vm0, %v2145_v48 }
 0x125   :  { %2624 = vmatmul.mubr.msk.bf16.vlgmr.msra.gmra.mxu0 %vm189_vm1, %v2672_v43 }
 0x126   :  { %2024 = vmatprep.mubr.bf16.mxu0 %v2736_v8  ;;  %2187 = vmatpush1.bf16.msra.mxu0 %v2155_v50  ;;  %v262_v50 = vadd.f32 %v3133_v55, %v148_v27  ;;  %v317_v55 = vadd.f32 %v316_v16, %v3188_v39 }
 0x127   :  { %2641 = vmatprep.subr.msk.bf16.mxu0 %vm196_vm0, %v2147_v53 }
 0x129   :  { %2622 = vmatmul.mubr.msk.bf16.gmra.mxu1 %vm189_vm1, %v2673_v54 }
 0x12a   :  { %2067 = vmatprep.mubr.bf16.mxu1 %v2736_v8 }
 0x12d   :  { %2625 = vmatmul.mubr.msk.bf16.gmra.mxu0 %vm189_vm1, %v2673_v54 }
 0x12e   :  { %2204 = vmatprep.mubr.bf16.mxu0 %v2736_v8 }
 0x131   :  { %2627 = vmatmul.mubr.msk.bf16.vlgmr.msra.gmra.mxu1 %vm189_vm1, %v2672_v43  ;;  %v307_v43 = vadd.f32 %v306_v7, %v143_v23 }
 0x132   :  { %2240 = vmatpush1.bf16.msra.mxu1 %v2161_v60  ;;  %2077 = vmatprep.mubr.bf16.mxu1 %v2736_v8  ;;  %v315_v60 = vadd.f32 %v314_v14, %v148_v27 }
 0x135   :  { %2636 = vmatmul.mubr.msk.bf16.vlgmr.msra.gmra.mxu0 %vm189_vm1, %v2674_v0 }
 0x136   :  { %2214 = vmatprep.mubr.bf16.mxu0 %v2736_v8  ;;  %2293 = vmatpush1.bf16.msra.mxu0 %v2167_v1 }
 0x139   :  { %2628 = vmatmul.mubr.msk.bf16.gmra.mxu1 %vm189_vm1, %v2673_v54 }
 0x13a   :  { %2257 = vmatprep.mubr.bf16.mxu1 %v2736_v8 }
 0x13d   :  { %2637 = vmatmul.mubr.msk.bf16.gmra.mxu0 %vm189_vm1, %v2675_v6 }
 0x13e   :  { %2310 = vmatprep.mubr.bf16.mxu0 %v2736_v8 }
 0x141   :  { %2639 = vmatmul.mubr.msk.bf16.vlgmr.msra.gmra.mxu1 %vm189_vm1, %v2674_v0 }
 0x142   :  { %2267 = vmatprep.mubr.bf16.mxu1 %v2736_v8 }
 0x145   :  { %2642 = vmatmul.mubr.msk.bf16.vlgmr.msra.gmra.mxu0 %vm189_vm1, %v2674_v0  ;;  %v266_v0 = vadd.f32 %v3144_v61, %v3188_v39 }
 0x146   :  { %2320 = vmatprep.mubr.bf16.mxu0 %v2736_v8  ;;  %v252_v8 = vadd.f32 %v251_v58, %v138_v18  ;;  %v313_v58 = vadd.f32 %v312_v12, %v148_v27 }
 0x149   :  { %2640 = vmatmul.mubr.msk.bf16.gmra.mxu1 %vm189_vm1, %v2675_v6 }
 0x14d   :  { %2643 = vmatmul.mubr.msk.bf16.gmra.mxu0 %vm189_vm1, %v2675_v6  ;;  %v356_v6 = vadd.f32 %v3155_v5, %v138_v18  ;;  %v366_v5 = vadd.f32 %v3174_v15, %v148_v27 }
 0x151   :  { %v505_v22 = vpop.f32.mrf.mxu1 }
 0x152   :  { %v630_v24 = vadd.f32 %v505_v22, %v250_v21 }
 0x153   :  { %v507_v26 = vpop.f32.mrf.mxu1 }
 0x154   :  { %v631_v28 = vadd.f32 %v507_v26, %v252_v8  ;;  %v360_v8 = vadd.f32 %v3166_v11, %v143_v23 }
 0x155   :  { %v509_v31 = vpop.f32.mrf.mxu1  ;;  %v558_v32 = vpop.f32.mrf.mxu0 }
 0x156   :  { %v636_v33 = vadd.f32 %v509_v31, %v254_v29  ;;  %v3186_v34 = vadd.f32 %v558_v32, %v303_v30  ;;  %v362_v30 = vadd.f32 %v3170_v13, %v143_v23 }
 0x157   :  { %v511_v37 = vpop.f32.mrf.mxu1  ;;  %v560_v38 = vpop.f32.mrf.mxu0 }
 0x158   :  { %v637_v40 = vadd.f32 %v511_v37, %v256_v35  ;;  %v3190_v41 = vadd.f32 %v560_v38, %v305_v36  ;;  %v368_v38 = vadd.f32 %v3177_v17, %v148_v27 }
 0x159   :  { %v515_v44 = vpop.f32.mrf.mxu1  ;;  %v562_v45 = vpop.f32.mrf.mxu0 }
 0x15a   :  { %v642_v47 = vadd.f32 %v515_v44, %v260_v42  ;;  %v3193_v48 = vadd.f32 %v562_v45, %v307_v43  ;;  %v370_v45 = vadd.f32 %v3182_v20, %v3188_v39 }
 0x15b   :  { %v517_v51 = vpop.f32.mrf.mxu1  ;;  %v564_v52 = vpop.f32.mrf.mxu0 }
 0x15c   :  { %v643_v53 = vadd.f32 %v517_v51, %v262_v50  ;;  %v3196_v54 = vadd.f32 %v564_v52, %v309_v46 }
 0x15d   :  { %v519_v59 = vpop.f32.mrf.mxu1  ;;  %v568_v49 = vpop.f32.mrf.mxu0 }
 0x15e   :  { %v648_v62 = vadd.f32 %v519_v59, %v264_v56  ;;  %v644_v63 = vadd.f32 %v568_v49, %v313_v58 }
 0x15f   :  { %v521_v1 = vpop.f32.mrf.mxu1  ;;  %v570_v2 = vpop.f32.mrf.mxu0 }
 0x160   :  { %v649_v3 = vadd.f32 %v521_v1, %v266_v0  ;;  %v645_v4 = vadd.f32 %v570_v2, %v315_v60 }
 0x161   :  { %v572_v7 = vpop.f32.mrf.mxu0  ;;  %v611_v10 = vpop.f32.mrf.mxu1 }
 0x162   :  { %v650_v12 = vadd.f32 %v572_v7, %v317_v55  ;;  %v634_v21 = vadd.f32 %v611_v10, %v356_v6 }
 0x163   :  { %v574_v14 = vpop.f32.mrf.mxu0  ;;  %v613_v22 = vpop.f32.mrf.mxu1 }
 0x164   :  { %v635_v26 = vadd.f32 %v613_v22, %v358_v57 }
 0x165   :  { %v615_v61 = vpop.f32.mrf.mxu1  ;;  %v748_v29 = vpop.f32.mrf.mxu0 }
 0x166   :  { %v640_v16 = vadd.f32 %v615_v61, %v360_v8  ;;  %v873_v31 = vadd.f32 %v748_v29, %v630_v24 }
 0x167   :  { %v617_v32 = vpop.f32.mrf.mxu1  ;;  %v750_v35 = vpop.f32.mrf.mxu0 }
 0x168   :  { %v641_v36 = vadd.f32 %v617_v32, %v362_v30  ;;  %v874_v37 = vadd.f32 %v750_v35, %v631_v28 }
 0x169   :  { %v621_v9 = vpop.f32.mrf.mxu1  ;;  %v752_v18 = vpop.f32.mrf.mxu0 }
 0x16a   :  { %v646_v42 = vadd.f32 %v621_v9, %v366_v5  ;;  %v879_v43 = vadd.f32 %v752_v18, %v636_v33 }
 0x16b   :  { %v623_v11 = vpop.f32.mrf.mxu1  ;;  %v754_v44 = vpop.f32.mrf.mxu0 }
 0x16c   :  { %v647_v13 = vadd.f32 %v623_v11, %v368_v38  ;;  %v880_v23 = vadd.f32 %v754_v44, %v637_v40 }
 0x16d   :  { %v625_v24 = vpop.f32.mrf.mxu1  ;;  %v758_v46 = vpop.f32.mrf.mxu0 }
 0x16e   :  { %v652_v50 = vadd.f32 %v625_v24, %v370_v45  ;;  %v885_v51 = vadd.f32 %v758_v46, %v642_v47 }
 0x16f   :  { %v627_v15 = vpop.f32.mrf.mxu1  ;;  %v760_v52 = vpop.f32.mrf.mxu0 }
 0x170   :  { %v886_v28 = vadd.f32 %v760_v52, %v643_v53 }
 0x171   :  { %v762_v56 = vpop.f32.mrf.mxu0  ;;  %v801_v58 = vpop.f32.mrf.mxu1 }
 0x172   :  { %v891_v59 = vadd.f32 %v762_v56, %v648_v62  ;;  %v875_v17 = vadd.f32 %v801_v58, %v3186_v34 }
 0x173   :  { %v764_v27 = vpop.f32.mrf.mxu0  ;;  %v803_v33 = vpop.f32.mrf.mxu1 }
 0x174   :  { %v892_v49 = vadd.f32 %v764_v27, %v649_v3  ;;  %v876_v60 = vadd.f32 %v803_v33, %v3190_v41  ;;  %v319_v3 = vadd.f32 %v3180_v19, %v3188_v39 }
 0x175   :  { %v805_v20 = vpop.f32.mrf.mxu1  ;;  %v854_v0 = vpop.f32.mrf.mxu0 }
 0x176   :  { %v881_v40 = vadd.f32 %v805_v20, %v3193_v48  ;;  %v877_v1 = vadd.f32 %v854_v0, %v634_v21  ;;  %v651_v48 = vadd.f32 %v574_v14, %v319_v3 }
 0x177   :  { %v807_v2 = vpop.f32.mrf.mxu1  ;;  %v856_v47 = vpop.f32.mrf.mxu0 }
 0x178   :  { %v882_v55 = vadd.f32 %v807_v2, %v3196_v54  ;;  %v878_v53 = vadd.f32 %v856_v47, %v635_v26  ;;  %v372_v54 = vadd.f32 %v3184_v25, %v3188_v39 }
 0x179   :  { %v811_v6 = vpop.f32.mrf.mxu1  ;;  %v858_v7 = vpop.f32.mrf.mxu0 }
 0x17a   :  { %v887_v62 = vadd.f32 %v811_v6, %v644_v63  ;;  %v883_v10 = vadd.f32 %v858_v7, %v640_v16  ;;  %v653_v5 = vadd.f32 %v627_v15, %v372_v54 }
 0x17b   :  { %v813_v34 = vpop.f32.mrf.mxu1  ;;  %v860_v57 = vpop.f32.mrf.mxu0 }
 0x17c   :  { %v888_v41 = vadd.f32 %v813_v34, %v645_v4  ;;  %v884_v22 = vadd.f32 %v860_v57, %v641_v36 }
 0x17d   :  { %v815_v8 = vpop.f32.mrf.mxu1  ;;  %v864_v61 = vpop.f32.mrf.mxu0 }
 0x17e   :  { %v893_v21 = vadd.f32 %v815_v8, %v650_v12  ;;  %v889_v29 = vadd.f32 %v864_v61, %v646_v42 }
 0x17f   :  { %v817_v30 = vpop.f32.mrf.mxu1  ;;  %v866_v32 = vpop.f32.mrf.mxu0 }
 0x180   :  { %v894_v26 = vadd.f32 %v817_v30, %v651_v48  ;;  %v890_v63 = vadd.f32 %v866_v32, %v647_v13 }
 0x181   :  { %v868_v16 = vpop.f32.mrf.mxu0  ;;  %v991_v35 = vpop.f32.mrf.mxu1 }
 0x182   :  { %v895_v9 = vadd.f32 %v868_v16, %v652_v50  ;;  %v1116_v18 = vadd.f32 %v991_v35, %v873_v31 }
 0x183   :  { %v870_v19 = vpop.f32.mrf.mxu0  ;;  %v993_v4 = vpop.f32.mrf.mxu1 }
 0x184   :  { %v896_v36 = vadd.f32 %v870_v19, %v653_v5  ;;  %v1117_v38 = vadd.f32 %v993_v4, %v874_v37 }
 0x185   :  { %v995_v11 = vpop.f32.mrf.mxu1  ;;  %v1044_v14 = vpop.f32.mrf.mxu0 }
 0x186   :  { %v1122_v12 = vadd.f32 %v995_v11, %v879_v43  ;;  %v1118_v42 = vadd.f32 %v1044_v14, %v875_v17 }
 0x187   :  { %v997_v44 = vpop.f32.mrf.mxu1  ;;  %v1046_v45 = vpop.f32.mrf.mxu0 }
 0x188   :  { %v1123_v24 = vadd.f32 %v997_v44, %v880_v23  ;;  %v1119_v46 = vadd.f32 %v1046_v45, %v876_v60 }
 0x189   :  { %v1001_v25 = vpop.f32.mrf.mxu1  ;;  %v1048_v39 = vpop.f32.mrf.mxu0 }
 0x18a   :  { %v1128_v13 = vadd.f32 %v1001_v25, %v885_v51  ;;  %v1124_v52 = vadd.f32 %v1048_v39, %v881_v40 }
 0x18b   :  { %v1003_v56 = vpop.f32.mrf.mxu1  ;;  %v1050_v15 = vpop.f32.mrf.mxu0 }
 0x18c   :  { %v1129_v50 = vadd.f32 %v1003_v56, %v886_v28  ;;  %v1125_v31 = vadd.f32 %v1050_v15, %v882_v55 }
 0x18d   :  { %v1005_v58 = vpop.f32.mrf.mxu1  ;;  %v1054_v27 = vpop.f32.mrf.mxu0 }
 0x18e   :  { %v1134_v33 = vadd.f32 %v1005_v58, %v891_v59  ;;  %v1130_v37 = vadd.f32 %v1054_v27, %v887_v62 }
 0x18f   :  { %v1007_v20 = vpop.f32.mrf.mxu1  ;;  %v1056_v0 = vpop.f32.mrf.mxu0 }
 0x190   :  { %v1135_v43 = vadd.f32 %v1007_v20, %v892_v49  ;;  %v1131_v17 = vadd.f32 %v1056_v0, %v888_v41 }
 0x191   :  { %v1058_v2 = vpop.f32.mrf.mxu0  ;;  %v1097_v47 = vpop.f32.mrf.mxu1 }
 0x192   :  { %v1136_v23 = vadd.f32 %v1058_v2, %v893_v21  ;;  %v1120_v60 = vadd.f32 %v1097_v47, %v877_v1 }
 0x193   :  { %v1060_v6 = vpop.f32.mrf.mxu0  ;;  %v1099_v7 = vpop.f32.mrf.mxu1 }
 0x194   :  { %v1137_v51 = vadd.f32 %v1060_v6, %v894_v26  ;;  %v1121_v40 = vadd.f32 %v1099_v7, %v878_v53 }
 0x195   :  { %v1101_v34 = vpop.f32.mrf.mxu1  ;;  %v1234_v57 = vpop.f32.mrf.mxu0 }
 0x196   :  { %v1126_v28 = vadd.f32 %v1101_v34, %v883_v10  ;;  %v1359_v55 = vadd.f32 %v1234_v57, %v1116_v18 }
 0x197   :  { %v1103_v3 = vpop.f32.mrf.mxu1  ;;  %v1236_v8 = vpop.f32.mrf.mxu0 }
 0x198   :  { %v1127_v59 = vadd.f32 %v1103_v3, %v884_v22  ;;  %v1360_v62 = vadd.f32 %v1236_v8, %v1117_v38 }
 0x199   :  { %v1107_v61 = vpop.f32.mrf.mxu1  ;;  %v1238_v48 = vpop.f32.mrf.mxu0 }
 0x19a   :  { %v1132_v49 = vadd.f32 %v1107_v61, %v889_v29  ;;  %v3219_v41 = vadd.f32 %v1238_v48, %v1122_v12 }
 0x19b   :  { %v1109_v30 = vpop.f32.mrf.mxu1  ;;  %v1240_v21 = vpop.f32.mrf.mxu0 }
 0x19c   :  { %v1133_v1 = vadd.f32 %v1109_v30, %v890_v63  ;;  %v3221_v32 = vadd.f32 %v1240_v21, %v1123_v24 }
 0x19d   :  { %v1111_v54 = vpop.f32.mrf.mxu1  ;;  %v1244_v53 = vpop.f32.mrf.mxu0 }
 0x19e   :  { %v1138_v26 = vadd.f32 %v1111_v54, %v895_v9  ;;  %v1371_v16 = vadd.f32 %v1244_v53, %v1128_v13 }
 0x19f   :  { %v1113_v10 = vpop.f32.mrf.mxu1  ;;  %v1246_v35 = vpop.f32.mrf.mxu0 }
 0x1a0   :  { %v1139_v5 = vadd.f32 %v1113_v10, %v896_v36  ;;  %v1372_v18 = vadd.f32 %v1246_v35, %v1129_v50 }
 0x1a1   :  { %v1248_v22 = vpop.f32.mrf.mxu0  ;;  %v1287_v19 = vpop.f32.mrf.mxu1 }
 0x1a2   :  { %v3223_v4 = vadd.f32 %v1248_v22, %v1134_v33  ;;  %v1361_v29 = vadd.f32 %v1287_v19, %v1118_v42 }
 0x1a3   :  { %v1250_v38 = vpop.f32.mrf.mxu0  ;;  %v1289_v11 = vpop.f32.mrf.mxu1 }
 0x1a4   :  { %v3225_v14 = vadd.f32 %v1250_v38, %v1135_v43  ;;  %v1362_v63 = vadd.f32 %v1289_v11, %v1119_v46 }
 0x1a5   :  { %v1291_v12 = vpop.f32.mrf.mxu1  ;;  %v1340_v44 = vpop.f32.mrf.mxu0 }
 0x1a6   :  { %v1367_v45 = vadd.f32 %v1291_v12, %v1124_v52  ;;  %v1363_v24 = vadd.f32 %v1340_v44, %v1120_v60 }
 0x1a7   :  { %v1293_v9 = vpop.f32.mrf.mxu1  ;;  %v1342_v25 = vpop.f32.mrf.mxu0 }
 0x1a8   :  { %v1368_v39 = vadd.f32 %v1293_v9, %v1125_v31  ;;  %v1364_v13 = vadd.f32 %v1342_v25, %v1121_v40 }
 0x1a9   :  { %v1297_v36 = vpop.f32.mrf.mxu1  ;;  %v1344_v56 = vpop.f32.mrf.mxu0 }
 0x1aa   :  { %v1373_v15 = vadd.f32 %v1297_v36, %v1130_v37  ;;  %v1369_v50 = vadd.f32 %v1344_v56, %v1126_v28 }
 0x1ab   :  { %v1299_v58 = vpop.f32.mrf.mxu1  ;;  %v1346_v27 = vpop.f32.mrf.mxu0 }
 0x1ac   :  { %v1374_v42 = vadd.f32 %v1299_v58, %v1131_v17  ;;  %v1370_v33 = vadd.f32 %v1346_v27, %v1127_v59 }
 0x1ad   :  { %v1301_v20 = vpop.f32.mrf.mxu1  ;;  %v1350_v0 = vpop.f32.mrf.mxu0 }
 0x1ae   :  { %v1379_v43 = vadd.f32 %v1301_v20, %v1136_v23  ;;  %v1375_v46 = vadd.f32 %v1350_v0, %v1132_v49 }
 0x1af   :  { %v1303_v2 = vpop.f32.mrf.mxu1  ;;  %v1352_v47 = vpop.f32.mrf.mxu0 }
 0x1b0   :  { %v1380_v52 = vadd.f32 %v1303_v2, %v1137_v51  ;;  %v1376_v60 = vadd.f32 %v1352_v47, %v1133_v1 }
 0x1b1   :  { %v1354_v6 = vpop.f32.mrf.mxu0  ;;  %v1477_v7 = vpop.f32.mrf.mxu1 }
 0x1b2   :  { %v3227_v31 = vadd.f32 %v1354_v6, %v1138_v26  ;;  %v3229_v40 = vadd.f32 %v1477_v7, %v1359_v55 }
 0x1b3   :  { %v1356_v37 = vpop.f32.mrf.mxu0  ;;  %v1479_v34 = vpop.f32.mrf.mxu1 }
 0x1b4   :  { %v3231_v57 = vadd.f32 %v1356_v37, %v1139_v5  ;;  %v3233_v17 = vadd.f32 %v1479_v34, %v1360_v62 }
 0x1b5   :  { %v3235_v28 = vpop.f32.mrf.mxu1  ;;  %v1530_v23 = vpop.f32.mrf.mxu0 }
 0x1b6   :  { %v3237_v3 = vadd.f32 %v1530_v23, %v1361_v29 }
 0x1b7   :  { %v3239_v8 = vpop.f32.mrf.mxu1  ;;  %v1532_v51 = vpop.f32.mrf.mxu0 }
 0x1b8   :  { %v3241_v59 = vadd.f32 %v1532_v51, %v1362_v63 }
 0x1b9   :  { %v1487_v61 = vpop.f32.mrf.mxu1  ;;  %v1534_v48 = vpop.f32.mrf.mxu0 }
 0x1ba   :  { %v3243_v55 = vadd.f32 %v1487_v61, %v1371_v16  ;;  %v3245_v49 = vadd.f32 %v1534_v48, %v1367_v45 }
 0x1bb   :  { %v1489_v30 = vpop.f32.mrf.mxu1  ;;  %v1536_v21 = vpop.f32.mrf.mxu0 }
 0x1bc   :  { %v3247_v62 = vadd.f32 %v1489_v30, %v1372_v18  ;;  %v3249_v1 = vadd.f32 %v1536_v21, %v1368_v39 }
 0x1bd   :  { %v3251_v54 = vpop.f32.mrf.mxu1  ;;  %v1540_v53 = vpop.f32.mrf.mxu0 }
 0x1be   :  { %v3253_v26 = vadd.f32 %v1540_v53, %v1373_v15 }
 0x1bf   :  { %v3255_v10 = vpop.f32.mrf.mxu1  ;;  %v1542_v35 = vpop.f32.mrf.mxu0 }
 0x1c0   :  { %3484 = vst [vmem:[#allocation5_spill] sm:$0xff] %v3253_v26  ;;  %v3257_v5 = vadd.f32 %v1542_v35, %v1374_v42  ;;  %v1608_v26 = vadd.f32 %v3235_v28, %v3219_v41 }
 0x1c1   :  { %v1544_v16 = vpop.f32.mrf.mxu0  ;;  %v1583_v22 = vpop.f32.mrf.mxu1 }
 0x1c2   :  { %3485 = vst [vmem:[#allocation6_spill] sm:$0xff] %v3257_v5  ;;  %v3259_v19 = vadd.f32 %v1544_v16, %v1379_v43  ;;  %v3261_v29 = vadd.f32 %v1583_v22, %v1363_v24 }
 0x1c3   :  { %v1546_v18 = vpop.f32.mrf.mxu0  ;;  %v1585_v38 = vpop.f32.mrf.mxu1 }
 0x1c4   :  { %3486 = vst [vmem:[#allocation7_spill] sm:$0xff] %v3259_v19  ;;  %v3263_v11 = vadd.f32 %v1546_v18, %v1380_v52  ;;  %v3265_v63 = vadd.f32 %v1585_v38, %v1364_v13 }
 0x1c5   :  { %v1587_v12 = vpop.f32.mrf.mxu1  ;;  %v1720_v44 = vpop.f32.mrf.mxu0 }
 0x1c6   :  { %3487 = vst [vmem:[#allocation8_spill] sm:$0xff] %v3263_v11  ;;  %v3267_v45 = vadd.f32 %v1587_v12, %v1369_v50 }
 0x1c7   :  { %v1589_v9 = vpop.f32.mrf.mxu1  ;;  %v1722_v25 = vpop.f32.mrf.mxu0 }
 0x1c8   :  { %v3269_v39 = vadd.f32 %v1589_v9, %v1370_v33 }
 0x1c9   :  { %v1593_v36 = vpop.f32.mrf.mxu1  ;;  %v1724_v56 = vpop.f32.mrf.mxu0 }
 0x1ca   :  { %3488 = vst [vmem:[#allocation9_spill] sm:$0xff] %v3269_v39  ;;  %v3271_v15 = vadd.f32 %v1593_v36, %v1375_v46 }
 0x1cb   :  { %v1595_v24 = vpop.f32.mrf.mxu1  ;;  %v1726_v58 = vpop.f32.mrf.mxu0 }
 0x1cc   :  { %3489 = vst [vmem:[#allocation10_spill] sm:$0xff] %v3271_v15  ;;  %v3273_v27 = vadd.f32 %v1595_v24, %v1376_v60 }
 0x1cd   :  { %v3275_v42 = vpop.f32.mrf.mxu1  ;;  %v3277_v13 = vpop.f32.mrf.mxu0 }
 0x1ce   :  { %3490 = vst [vmem:[#allocation11_spill] sm:$0xff] %v3273_v27 }
 0x1cf   :  { %v3279_v20 = vpop.f32.mrf.mxu1  ;;  %v3281_v50 = vpop.f32.mrf.mxu0 }
 0x1d1   :  { %v3283_v0 = vpop.f32.mrf.mxu0  ;;  %v3285_v33 = vpop.f32.mrf.mxu1 }
 0x1d3   :  { %v3287_v43 = vpop.f32.mrf.mxu0  ;;  %v3289_v46 = vpop.f32.mrf.mxu1 }
 0x1d5   :  { %v3291_v2 = vpop.f32.mrf.mxu1  ;;  %v3293_v47 = vpop.f32.mrf.mxu0 }
 0x1d7   :  { %v3295_v52 = vpop.f32.mrf.mxu1  ;;  %v3297_v60 = vpop.f32.mrf.mxu0 }
 0x1d9   :  { %v3299_v6 = vpop.f32.mrf.mxu1  ;;  %v3301_v7 = vpop.f32.mrf.mxu0 }
 0x1da   :  { %3491 = vst [vmem:[#allocation12_spill] sm:$0xff] %v3299_v6 }
 0x1db   :  { %v3303_v37 = vpop.f32.mrf.mxu1  ;;  %v3305_v34 = vpop.f32.mrf.mxu0 }
 0x1dc   :  { %3492 = vst [vmem:[#allocation13_spill] sm:$0xff] %v3303_v37  ;;  %3493 = vst [vmem:[#allocation14_spill] sm:$0xff] %v3305_v34  ;;  %v1845_v37 = vadd.f32 %v1720_v44, %v3229_v40 }
 0x1dd   :  { %v3307_v23 = vpop.f32.mrf.mxu1  ;;  %v3309_v51 = vpop.f32.mrf.mxu0 }
 0x1de   :  { %3494 = vst [vmem:[#allocation15_spill] sm:$0xff] %v3307_v23  ;;  %3495 = vst [vmem:[#allocation16_spill] sm:$0xff] %v3309_v51 }
 0x1df   :  { %v3311_v61 = vpop.f32.mrf.mxu1  ;;  %v3313_v48 = vpop.f32.mrf.mxu0 }
 0x1e0   :  { %3496 = vst [vmem:[#allocation17_spill] sm:$0xff] %v3311_v61  ;;  %3497 = vst [vmem:[#allocation18_spill] sm:$0xff] %v3313_v48  ;;  %v1846_v61 = vadd.f32 %v1722_v25, %v3233_v17 }
 0x1e1   :  { %v3315_v30 = vpop.f32.mrf.mxu0  ;;  %v1963_v21 = vpop.f32.mrf.mxu1 }
 0x1e2   :  { %3498 = vst [vmem:[#allocation19_spill] sm:$0xff] %v3315_v30  ;;  %v2088_v11 = vadd.f32 %v1963_v21, %v1845_v37 }
 0x1e3   :  { %v3317_v53 = vpop.f32.mrf.mxu0  ;;  %v1965_v35 = vpop.f32.mrf.mxu1 }
 0x1e4   :  { %3499 = vst [vmem:[#allocation20_spill] sm:$0xff] %v3317_v53  ;;  %v2089_v19 = vadd.f32 %v1965_v35, %v1846_v61  ;;  %v1853_v61 = vadd.f32 %v3291_v2, %v3245_v49  ;;  %v1850_v35 = vadd.f32 %v3297_v60, %v3265_v63  ;;  %v3509_v60 = vld [vmem:[#allocation9_spill] sm:$0xff] }
 0x1e5   :  { %v1967_v16 = vpop.f32.mrf.mxu1  ;;  %v2016_v22 = vpop.f32.mrf.mxu0 }
 0x1e7   :  { %v1969_v18 = vpop.f32.mrf.mxu1  ;;  %v3319_v38 = vpop.f32.mrf.mxu0 }
 0x1e9   :  { %v1973_v12 = vpop.f32.mrf.mxu1  ;;  %v3321_v9 = vpop.f32.mrf.mxu0 }
 0x1eb   :  { %v3323_v36 = vpop.f32.mrf.mxu1  ;;  %v3325_v24 = vpop.f32.mrf.mxu0 }
 0x1ec   :  { %3500 = vst [vmem:[#allocation21_spill] sm:$0xff] %v3325_v24 }
 0x1ed   :  { %v1977_v27 = vpop.f32.mrf.mxu1  ;;  %v3327_v48 = vpop.f32.mrf.mxu0 }
 0x1ee   :  { %3501 = vst [vmem:[#allocation22_spill] sm:$0xff] %v3327_v48 }
 0x1ef   :  { %v1979_v51 = vpop.f32.mrf.mxu1  ;;  %v3329_v15 = vpop.f32.mrf.mxu0 }
 0x1f0   :  { %3502 = vst [vmem:[#allocation23_spill] sm:$0xff] %v3329_v15  ;;  %v1609_v15 = vadd.f32 %v3239_v8, %v3221_v32  ;;  %v1620_v32 = vadd.f32 %v3251_v54, %v3223_v4  ;;  %v1847_v4 = vadd.f32 %v3285_v33, %v3237_v3 }
 0x1f1   :  { %v3331_v53 = vpop.f32.mrf.mxu0  ;;  %v3333_v30 = vpop.f32.mrf.mxu1 }
 0x1f2   :  { %3503 = vst [vmem:[#allocation24_spill] sm:$0xff] %v3331_v53  ;;  %v1851_v53 = vadd.f32 %v1724_v56, %v1608_v26 }
 0x1f3   :  { %v3336_v5 = vpop.f32.mrf.mxu0  ;;  %v3338_v6 = vpop.f32.mrf.mxu1 }
 0x1f4   :  { %3504 = vst [vmem:[#allocation25_spill] sm:$0xff] %v3336_v5  ;;  %3505 = vst [vmem:[#allocation26_spill] sm:$0xff] %v3338_v6  ;;  %v1852_v5 = vadd.f32 %v1726_v58, %v1609_v15  ;;  %v2094_v39 = vadd.f32 %v1967_v16, %v1851_v53  ;;  %v2096_v53 = vadd.f32 %v3321_v9, %v1853_v61 }
 0x1f5   :  { %v3343_v48 = vpop.f32.mrf.mxu1  ;;  %v2206_v23 = vpop.f32.mrf.mxu0 }
 0x1f6   :  { %3506 = vst [vmem:[#allocation27_spill] sm:$0xff] %v3343_v48  ;;  %v2331_v34 = vadd.f32 %v2206_v23, %v2088_v11  ;;  %v2095_v28 = vadd.f32 %v1969_v18, %v1852_v5  ;;  %v1857_v11 = vadd.f32 %v3277_v13, %v3243_v55  ;;  %v1621_v5 = vadd.f32 %v3255_v10, %v3225_v14 }
 0x1f7   :  { %v3347_v40 = vpop.f32.mrf.mxu1  ;;  %v2208_v44 = vpop.f32.mrf.mxu0  ;;  %v1848_v13 = vadd.f32 %v3289_v46, %v3241_v59  ;;  %v3371_v14 = vadd.f32 %v3275_v42, %v3227_v31  ;;  %v1858_v10 = vadd.f32 %v3281_v50, %v3247_v62  ;;  %v1849_v31 = vadd.f32 %v3293_v47, %v3261_v29 }
 0x1f8   :  { %v2355_v6 = vmul.f32 0.5, %v2331_v34  ;;  %v2332_v24 = vadd.f32 %v2208_v44, %v2089_v19  ;;  %v2100_v54 = vadd.f32 %v1973_v12, %v1857_v11  ;;  %v1864_v55 = vadd.f32 %v3287_v43, %v1621_v5 }
 0x1f9   :  { %v3349_v41 = vpop.f32.mrf.mxu1  ;;  %v2210_v17 = vpop.f32.mrf.mxu0  ;;  %v2091_v43 = vadd.f32 %v3319_v38, %v1848_v13  ;;  %v1854_v62 = vadd.f32 %v3295_v52, %v3249_v1  ;;  %v2101_v49 = vadd.f32 %v3323_v36, %v1858_v10  ;;  %v1855_v1 = vadd.f32 %v3301_v7, %v3267_v45  ;;  %v3507_v52 = vld [vmem:[#allocation21_spill] sm:$0xff] }
 0x1fa   :  { %v2356_v25 = vmul.f32 0.5, %v2332_v24  ;;  %v2337_v37 = vadd.f32 %v2210_v17, %v2094_v39  ;;  %2676 = vtanh.f32 %v2355_v6  ;;  %v1863_v39 = vadd.f32 %v3283_v0, %v1620_v32  ;;  %v3511_v17 = vld [vmem:[#allocation7_spill] sm:$0xff] }
 0x1fb   :  { %v3351_v21 = vpop.f32.mrf.mxu1  ;;  %v2212_v48 = vpop.f32.mrf.mxu0  ;;  %v2090_v0 = vadd.f32 %v2016_v22, %v1847_v4  ;;  %v2097_v16 = vadd.f32 %v3507_v52, %v1854_v62  ;;  %v3508_v38 = vld [vmem:[#allocation26_spill] sm:$0xff]  ;;  %v3515_v4 = vld [vmem:[#allocation17_spill] sm:$0xff] }
 0x1fc   :  { %v2379_v8 = vmul.f32 0.5, %v2337_v37  ;;  %v2338_v26 = vadd.f32 %v2212_v48, %v2095_v28  ;;  %2678 = vtanh.f32 %v2356_v25  ;;  %v2106_v34 = vadd.f32 %v1977_v27, %v1863_v39  ;;  %v3512_v28 = vld [vmem:[#allocation15_spill] sm:$0xff] }
 0x1fd   :  { %v3357_v19 = vpop.f32.mrf.mxu1  ;;  %v2216_v56 = vpop.f32.mrf.mxu0  ;;  %v2107_v48 = vadd.f32 %v1979_v51, %v1864_v55  ;;  %v3380_v27 = vadd.f32 %v3279_v20, %v3231_v57  ;;  %v2092_v57 = vadd.f32 %v3333_v30, %v1849_v31  ;;  %v2093_v12 = vadd.f32 %v3508_v38, %v1850_v35  ;;  %v3510_v30 = vld [vmem:[#allocation14_spill] sm:$0xff]  ;;  %v3513_v7 = vld [vmem:[#allocation27_spill] sm:$0xff] }
 0x1fe   :  { %2680 = vtanh.f32 %v2379_v8  ;;  %v2380_v15 = vmul.f32 0.5, %v2338_v26  ;;  %v2343_v3 = vadd.f32 %v2216_v56, %v2100_v54  ;;  %v1856_v44 = vadd.f32 %v3510_v30, %v3509_v60  ;;  %v3522_v38 = vld [vmem:[#allocation19_spill] sm:$0xff] }
 0x1ff   :  { %v3364_v58 = vpop.f32.mrf.mxu1  ;;  %v2218_v6 = vpop.f32.mrf.mxu0  ;;  %v1865_v25 = vadd.f32 %v3512_v28, %v3511_v17  ;;  %v2098_v8 = vadd.f32 %v3513_v7, %v1855_v1  ;;  %v3519_v1 = vld [vmem:[#allocation12_spill] sm:$0xff]  ;;  %v3524_v28 = vld [vmem:[#allocation22_spill] sm:$0xff] }
 0x200   :  { %2682 = vtanh.f32 %v2380_v15  ;;  %v2403_v20 = vmul.f32 0.5, %v2343_v3  ;;  %v2344_v22 = vadd.f32 %v2218_v6, %v2101_v49  ;;  %v3514_v15 = vld [vmem:[#allocation8_spill] sm:$0xff]  ;;  %v2099_v6 = vadd.f32 %v3347_v40, %v1856_v44 }
 0x201   :  { %v2220_v33 = vpop.f32.mrf.mxu0  ;;  %v2259_v23 = vpop.f32.mrf.mxu1  ;;  %v1866_v54 = vadd.f32 %v3515_v4, %v3514_v15  ;;  %v3523_v44 = vld [vmem:[#allocation20_spill] sm:$0xff] }
 0x202   :  { %v2349_v59 = vadd.f32 %v2220_v33, %v2106_v34  ;;  %v2333_v42 = vadd.f32 %v2259_v23, %v2090_v0  ;;  %v2404_v55 = vmul.f32 0.5, %v2344_v22  ;;  %v3516_v23 = vld [vmem:[#allocation24_spill] sm:$0xff]  ;;  %v3521_v22 = vld [vmem:[#allocation13_spill] sm:$0xff]  ;;  %v1868_v17 = vadd.f32 %v3523_v44, %v3380_v27 }
 0x203   :  { %v2222_v50 = vpop.f32.mrf.mxu0  ;;  %v2261_v46 = vpop.f32.mrf.mxu1  ;;  %v2108_v61 = vadd.f32 %v3516_v23, %v1865_v25 }
 0x204   :  { %v2350_v2 = vadd.f32 %v2222_v50, %v2107_v48  ;;  %v2334_v51 = vadd.f32 %v2261_v46, %v2091_v43  ;;  %2684 = vtanh.f32 %v2349_v59  ;;  %v2357_v9 = vmul.f32 0.5, %v2333_v42  ;;  %v3517_v46 = vld [vmem:[#allocation25_spill] sm:$0xff] }
 0x205   :  { %v2263_v29 = vpop.f32.mrf.mxu1  ;;  %v2312_v47 = vpop.f32.mrf.mxu0 }
 0x206   :  { %v2339_v18 = vadd.f32 %v2263_v29, %v2096_v53  ;;  %2686 = vtanh.f32 %v2350_v2  ;;  %v2335_v36 = vadd.f32 %v2312_v47, %v2092_v57  ;;  %v2358_v37 = vmul.f32 0.5, %v2334_v51  ;;  %v3518_v47 = vld [vmem:[#allocation5_spill] sm:$0xff] }
 0x207   :  { %v2265_v24 = vpop.f32.mrf.mxu1  ;;  %v2314_v63 = vpop.f32.mrf.mxu0  ;;  %2688 = vtanh.f32 %v2403_v20  ;;  %v2109_v53 = vadd.f32 %v3517_v46, %v1866_v54  ;;  %v1859_v52 = vadd.f32 %v3519_v1, %v3518_v47 }
 0x208   :  { %v2381_v32 = vmul.f32 0.5, %v2339_v18  ;;  %v2677_v45 = vpop.eup %2676  ;;  %v2340_v26 = vadd.f32 %v2265_v24, %v2097_v16  ;;  %v2336_v11 = vadd.f32 %v2314_v63, %v2093_v12  ;;  %v2359_v34 = vmul.f32 0.5, %v2335_v36  ;;  %v3520_v16 = vld [vmem:[#allocation6_spill] sm:$0xff] }
 0x209   :  { %v2269_v56 = vpop.f32.mrf.mxu1  ;;  %v2316_v5 = vpop.f32.mrf.mxu0  ;;  %v2367_v43 = vadd.f32 1.0, %v2677_v45  ;;  %v1860_v18 = vadd.f32 %v3521_v22, %v3520_v16  ;;  %v1867_v12 = vadd.f32 %v3522_v38, %v3371_v14  ;;  %v2102_v25 = vadd.f32 %v3524_v28, %v1859_v52  ;;  %v2434_v14 = vld [vmem:[%s3481_s4 + $0x8] sm:$0xff] }
 0x20a   :  { %v2679_v39 = vpop.eup %2678  ;;  %2690 = vtanh.f32 %v2381_v32  ;;  %v2382_v10 = vmul.f32 0.5, %v2340_v26  ;;  %v2341_v0 = vadd.f32 %v2316_v5, %v2098_v8  ;;  %v2360_v31 = vmul.f32 0.5, %v2336_v11  ;;  %v3525_v11 = vld [vmem:[#allocation23_spill] sm:$0xff] }
 0x20b   :  { %v2681_v13 = vpop.eup %2680  ;;  %2692 = vtanh.f32 %v2357_v9  ;;  %v2271_v3 = vpop.f32.mrf.mxu1  ;;  %v2368_v49 = vadd.f32 1.0, %v2679_v39  ;;  %v2433_v9 = vld [vmem:[%s3481_s4] sm:$0xff]  ;;  %v2373_v36 = vmul.f32 0.5, %v2367_v43  ;;  %v2103_v5 = vadd.f32 %v3525_v11, %v1860_v18 }
 0x20c   :  { %v2318_v33 = vpop.f32.mrf.mxu0  ;;  %v2391_v48 = vadd.f32 1.0, %v2681_v13  ;;  %2694 = vtanh.f32 %v2358_v37  ;;  %v2383_v62 = vmul.f32 0.5, %v2341_v0  ;;  %v2110_v37 = vadd.f32 %v3357_v19, %v1867_v12  ;;  %v3526_v13 = vld [vmem:[#allocation10_spill] sm:$0xff]  ;;  %v3527_v19 = vld [vmem:[#allocation16_spill] sm:$0xff] }
 0x20d   :  { %v2683_v59 = vpop.eup %2682  ;;  %2696 = vtanh.f32 %v2382_v10  ;;  %v2342_v42 = vadd.f32 %v2318_v33, %v2099_v6  ;;  %v2273_v40 = vpop.f32.mrf.mxu1  ;;  %v2374_v32 = vmul.f32 0.5, %v2368_v49  ;;  %v2111_v39 = vadd.f32 %v3364_v58, %v1868_v17 }
 0x20e   :  { %v2322_v50 = vpop.f32.mrf.mxu0  ;;  %v2392_v2 = vadd.f32 1.0, %v2683_v59  ;;  %2698 = vtanh.f32 %v2404_v55  ;;  %v2397_v51 = vmul.f32 0.5, %v2391_v48  ;;  %v2351_v57 = vadd.f32 %v2273_v40, %v2108_v61  ;;  %v3529_v61 = vld [vmem:[#allocation18_spill] sm:$0xff] }
 0x20f   :  { %2700 = vtanh.f32 %v2359_v34  ;;  %v2384_v35 = vmul.f32 0.5, %v2342_v42  ;;  %v2275_v20 = vpop.f32.mrf.mxu1  ;;  %v2345_v27 = vadd.f32 %v2269_v56, %v2102_v25  ;;  %v1861_v34 = vadd.f32 %v3527_v19, %v3526_v13  ;;  %v3528_v56 = vld [vmem:[#allocation11_spill] sm:$0xff] }
 0x210   :  { %v2324_v29 = vpop.f32.mrf.mxu0  ;;  %2702 = vtanh.f32 %v2383_v62  ;;  %v2398_v24 = vmul.f32 0.5, %v2392_v2  ;;  %v2352_v63 = vadd.f32 %v2275_v20, %v2109_v53  ;;  %v2439_v45 = vmul.f32 %v2433_v9, %v2397_v51 }
 0x211   :  { %2704 = vtanh.f32 %v2360_v31  ;;  %v2685_v30 = vpop.eup %2684  ;;  %v2346_v23 = vadd.f32 %v2271_v3, %v2103_v5  ;;  %v1862_v43 = vadd.f32 %v3529_v61, %v3528_v56  ;;  %v2104_v48 = vadd.f32 %v3349_v41, %v1861_v34 }
 0x212   :  { %v2326_v60 = vpop.f32.mrf.mxu0  ;;  %2706 = vtanh.f32 %v2384_v35  ;;  %v2445_v7 = vmul.f32 %v2685_v30, %v2373_v36  ;;  %v2440_v4 = vmul.f32 %v2434_v14, %v2398_v24  ;;  %v2405_v62 = vmul.f32 0.5, %v2345_v27 }
 0x213   :  { %2708 = vtanh.f32 %v2351_v57  ;;  %v2687_v26 = vpop.eup %2686  ;;  %v2353_v15 = vadd.f32 %v2326_v60, %v2110_v37  ;;  %v2105_v40 = vadd.f32 %v3351_v21, %v1862_v43  ;;  %v2347_v46 = vadd.f32 %v2322_v50, %v2104_v48 }
 0x214   :  { %v2328_v8 = vpop.f32.mrf.mxu0  ;;  %v2451_v54 = vadd.f32 %v2445_v7, %v2439_v45  ;;  %v2446_v6 = vmul.f32 %v2687_v26, %v2374_v32  ;;  %2710 = vtanh.f32 %v2352_v63  ;;  %v2689_v55 = vpop.eup %2688  ;;  %v2406_v2 = vmul.f32 0.5, %v2346_v23 }
 0x215   :  { %v2354_v10 = vadd.f32 %v2328_v8, %v2111_v39  ;;  %v2348_v41 = vadd.f32 %v2324_v29, %v2105_v40  ;;  %v2407_v16 = vmul.f32 0.5, %v2347_v46  ;;  %v2415_v50 = vadd.f32 1.0, %v2689_v55 }
 0x216   :  { %2457 = vst [vmem:[%s3483_s6] sm:$0xff] %v2451_v54  ;;  %2712 = vtanh.f32 %v2451_v54  ;;  %v2452_v33 = vadd.f32 %v2446_v6, %v2440_v4 }
 0x217   :  { %v2691_v0 = vpop.eup %2690  ;;  %2714 = vtanh.f32 %v2353_v15  ;;  %v2408_v36 = vmul.f32 0.5, %v2348_v41  ;;  %v2421_v25 = vmul.f32 0.5, %v2415_v50 }
 0x218   :  { %v2693_v58 = vpop.eup %2692  ;;  %2458 = vst [vmem:[%s3483_s6 + $0x8] sm:$0xff] %v2452_v33  ;;  %2716 = vtanh.f32 %v2452_v33  ;;  %v2393_v31 = vadd.f32 1.0, %v2691_v0 }
 0x219   :  { %v2695_v59 = vpop.eup %2694  ;;  %2718 = vtanh.f32 %v2354_v10  ;;  %v2369_v53 = vadd.f32 1.0, %v2693_v58 }
 0x21a   :  { %v2697_v42 = vpop.eup %2696  ;;  %v2370_v57 = vadd.f32 1.0, %v2695_v59  ;;  %v2399_v20 = vmul.f32 0.5, %v2393_v31  ;;  %2720 = vtanh.f32 %v2405_v62 }
 0x21b   :  { %v2699_v3 = vpop.eup %2698  ;;  %v2394_v49 = vadd.f32 1.0, %v2697_v42  ;;  %v2375_v22 = vmul.f32 0.5, %v2369_v53  ;;  %2722 = vtanh.f32 %v2406_v2 }
 0x21c   :  { %v2701_v51 = vpop.eup %2700  ;;  %v2416_v24 = vadd.f32 1.0, %v2699_v3  ;;  %v2376_v63 = vmul.f32 0.5, %v2370_v57  ;;  %2724 = vtanh.f32 %v2407_v16 }
 0x21d   :  { %v2703_v35 = vpop.eup %2702  ;;  %v2400_v18 = vmul.f32 0.5, %v2394_v49  ;;  %v2371_v12 = vadd.f32 1.0, %v2701_v51  ;;  %2726 = vtanh.f32 %v2408_v36 }
 0x21e   :  { %v2705_v47 = vpop.eup %2704  ;;  %v2395_v52 = vadd.f32 1.0, %v2703_v35  ;;  %v2422_v5 = vmul.f32 0.5, %v2416_v24 }
 0x21f   :  { %v2435_v1 = vld [vmem:[%s3481_s4 + $0x10] sm:$0xff]  ;;  %v2707_v21 = vpop.eup %2706  ;;  %v2436_v29 = vld [vmem:[%s3481_s4 + $0x18] sm:$0xff]  ;;  %v2372_v17 = vadd.f32 1.0, %v2705_v47  ;;  %v2437_v37 = vld [vmem:[%s3481_s4 + $0x20] sm:$0xff]  ;;  %v2377_v8 = vmul.f32 0.5, %v2371_v12 }
 0x220   :  { %v2709_v38 = vpop.eup %2708  ;;  %v2396_v9 = vadd.f32 1.0, %v2707_v21  ;;  %v2441_v60 = vmul.f32 %v2435_v1, %v2399_v20  ;;  %v2401_v28 = vmul.f32 0.5, %v2395_v52  ;;  %v2442_v14 = vmul.f32 %v2436_v29, %v2400_v18  ;;  %v2438_v27 = vld [vmem:[%s3481_s4 + $0x28] sm:$0xff] }
 0x221   :  { %v2447_v30 = vmul.f32 %v2709_v38, %v2375_v22  ;;  %v2711_v44 = vpop.eup %2710  ;;  %v2378_v54 = vmul.f32 0.5, %v2372_v17 }
 0x222   :  { %v2448_v45 = vmul.f32 %v2711_v44, %v2376_v63  ;;  %v2402_v26 = vmul.f32 0.5, %v2396_v9  ;;  %v2443_v6 = vmul.f32 %v2437_v37, %v2401_v28 }
 0x223   :  { %v2453_v32 = vadd.f32 %v2447_v30, %v2441_v60  ;;  %v2713_v7 = vpop.eup %2712 }
 0x224   :  { %v2715_v11 = vpop.eup %2714  ;;  %v2469_v39 = vmul.f32 %v2713_v7, %v2421_v25  ;;  %v2454_v15 = vadd.f32 %v2448_v45, %v2442_v14  ;;  %v2444_v34 = vmul.f32 %v2438_v27, %v2402_v26 }
 0x225   :  { %2459 = vst [vmem:[%s3483_s6 + $0x10] sm:$0xff] %v2453_v32  ;;  %2728 = vtanh.f32 %v2453_v32  ;;  %v2717_v4 = vpop.eup %2716  ;;  %v2449_v55 = vmul.f32 %v2715_v11, %v2377_v8 }
 0x226   :  { %v2719_v13 = vpop.eup %2718  ;;  %2475 = vst [vmem:[%s3482_s5] sm:$0xff] %v2469_v39  ;;  %v2470_v19 = vmul.f32 %v2717_v4, %v2422_v5  ;;  %2460 = vst [vmem:[%s3483_s6 + $0x18] sm:$0xff] %v2454_v15  ;;  %2730 = vtanh.f32 %v2454_v15 }
 0x227   :  { %v2455_v10 = vadd.f32 %v2449_v55, %v2443_v6  ;;  %v2450_v0 = vmul.f32 %v2719_v13, %v2378_v54  ;;  %v2721_v33 = vpop.eup %2720 }
 0x228   :  { %2476 = vst [vmem:[%s3482_s5 + $0x8] sm:$0xff] %v2470_v19  ;;  %v2723_v58 = vpop.eup %2722  ;;  %v2417_v56 = vadd.f32 1.0, %v2721_v33 }
 0x229   :  { %2461 = vst [vmem:[%s3483_s6 + $0x20] sm:$0xff] %v2455_v10  ;;  %2732 = vtanh.f32 %v2455_v10  ;;  %v2456_v23 = vadd.f32 %v2450_v0, %v2444_v34  ;;  %v2725_v61 = vpop.eup %2724  ;;  %v2418_v43 = vadd.f32 1.0, %v2723_v58 }
 0x22a   :  { %v2727_v48 = vpop.eup %2726  ;;  %v2423_v59 = vmul.f32 0.5, %v2417_v56  ;;  %v2419_v62 = vadd.f32 1.0, %v2725_v61 }
 0x22b   :  { %2462 = vst [vmem:[%s3483_s6 + $0x28] sm:$0xff] %v2456_v23  ;;  %2734 = vtanh.f32 %v2456_v23  ;;  %v2424_v42 = vmul.f32 0.5, %v2418_v43  ;;  %v2420_v3 = vadd.f32 1.0, %v2727_v48 }
 0x22c   :  { %v2425_v49 = vmul.f32 0.5, %v2419_v62 }
 0x22d   :  { %v2426_v51 = vmul.f32 0.5, %v2420_v3 }
 0x232   :  { %v2729_v31 = vpop.eup %2728 }
 0x233   :  { %v2471_v40 = vmul.f32 %v2729_v31, %v2423_v59  ;;  %v2731_v46 = vpop.eup %2730 }
 0x234   :  { %v2472_v53 = vmul.f32 %v2731_v46, %v2424_v42 }
 0x235   :  { %2477 = vst [vmem:[%s3482_s5 + $0x10] sm:$0xff] %v2471_v40 }
 0x236   :  { %v2733_v2 = vpop.eup %2732  ;;  %2478 = vst [vmem:[%s3482_s5 + $0x18] sm:$0xff] %v2472_v53 }
 0x237   :  { %v2473_v41 = vmul.f32 %v2733_v2, %v2425_v49 }
 0x238   :  { %v2735_v35 = vpop.eup %2734 }
 0x239   :  { %2479 = vst [vmem:[%s3482_s5 + $0x20] sm:$0xff] %v2473_v41  ;;  %v2474_v57 = vmul.f32 %v2735_v35, %v2426_v51 }
 0x23b   :  { %2480 = vst [vmem:[%s3482_s5 + $0x28] sm:$0xff] %v2474_v57 }

</bundles_post_ra>
